<compile_context>
chip_gen: v5e
topology: v5e:2x2
jax: 0.10.0
libtpu: 0.0.40
codegen_flags: <defaults>
</compile_context>

<pallas_src>
import jax
import jax.numpy as jnp
import numpy as np
from jax import lax
from jax.experimental import pallas as pl
from jax.experimental.pallas import tpu as pltpu

# ---- model sizes (as implied by the PyTorch module) ----
INPUT_SIZE = 1
HIDDEN = 50
OUTPUT_SIZE = 1
SEQ_LEN = 8

# ---- padded (TPU-friendly) sizes ----
HP = 128    # padded hidden dim (lane multiple)

# Kernel gate-slot layout: slot -> PyTorch gate index (i=0, f=1, g=2, o=3).
# Slots are [i, f, o, g] so one sigmoid covers slots 0..2, one tanh covers slot 3.
GATE_SLOTS = (0, 1, 3, 2)


def lstm_kernel(x_ref, wih_ref, whh_ref, b_ref, wlin_ref, blin_ref, out_ref):
    """LSTM recurrence + final Linear on the last hidden state.

    x_ref:    (SEQ_LEN,)    f32  SMEM  raw input sequence (input_size=1)
    wih_ref:  (1, 4*HP)     f32  VMEM  input->gates row (rank-1 proj, [i,f,o,g])
    whh_ref:  (HP, 4*HP)    bf16 VMEM  hidden->gates weights (transposed, [i,f,o,g])
    b_ref:    (1, 4*HP)     f32  VMEM  combined bias b_ih + b_hh ([i,f,o,g])
    wlin_ref: (1, HP)       f32  VMEM  linear weight row (single real output col)
    blin_ref: (1,)          f32  SMEM  linear bias
    out_ref:  (1, 1)        f32  VMEM  prediction for the LAST timestep
    """
    seq_len = x_ref.shape[0]
    hp = whh_ref.shape[0]

    # Loop-invariant small rows, loaded once (values, not refs).
    wih_row = wih_ref[...]          # (1, 4*HP) f32
    b_row = b_ref[...]              # (1, 4*HP) f32

    h0 = jnp.zeros((1, hp), jnp.float32)
    c0 = jnp.zeros((1, hp), jnp.float32)

    def step(t, carry):
        h, c = carry
        x_t = x_ref[t]                                       # scalar f32 from SMEM
        # Rank-1 input projection on the VPU + recurrent matmul on the MXU
        # (bf16 operands, f32 accumulation).
        gates = (x_t * wih_row + b_row
                 + jnp.dot(h.astype(jnp.bfloat16), whh_ref[...],
                           preferred_element_type=jnp.float32))  # (1, 4*HP)
        sig = jax.nn.sigmoid(gates[:, :3 * hp])              # i | f | o in one EUP pass
        i_g = sig[:, 0 * hp:1 * hp]
        f_g = sig[:, 1 * hp:2 * hp]
        o_g = sig[:, 2 * hp:3 * hp]
        g_g = jnp.tanh(gates[:, 3 * hp:4 * hp])
        c_new = f_g * c + i_g * g_g
        h_new = o_g * jnp.tanh(c_new)
        return (h_new, c_new)

    h_last, _ = lax.fori_loop(0, seq_len, step, (h0, c0), unroll=True)

    # Final Linear: one real output column -> VPU multiply + XLU lane reduce.
    out_ref[...] = (jnp.sum(h_last * wlin_ref[...], axis=-1, keepdims=True)
                    + blin_ref[0])


def prepare_params(w_ih, w_hh, b_ih, b_hh, w_lin, b_lin):
    """One-time (init-time) padding / transposition / gate reordering.

    Takes PyTorch-shaped params, returns padded TPU-layout params. Runs on the
    host (numpy) so nothing of this lands in the per-call hot path.
    """
    w_ih = np.asarray(w_ih, np.float32)       # (4*HIDDEN, 1)
    w_hh = np.asarray(w_hh, np.float32)       # (4*HIDDEN, HIDDEN)
    b_all = np.asarray(b_ih, np.float32) + np.asarray(b_hh, np.float32)
    w_lin = np.asarray(w_lin, np.float32)     # (1, HIDDEN)
    b_lin = np.asarray(b_lin, np.float32)     # (1,)

    wih_row = np.zeros((1, 4 * HP), np.float32)
    whh_p = np.zeros((HP, 4 * HP), np.float32)
    b_p = np.zeros((1, 4 * HP), np.float32)
    for slot, g in enumerate(GATE_SLOTS):       # place PyTorch gate g at slot
        rows = slice(g * HIDDEN, (g + 1) * HIDDEN)
        cols = slice(slot * HP, slot * HP + HIDDEN)
        wih_row[0, cols] = w_ih[rows, 0]
        whh_p[:HIDDEN, cols] = w_hh[rows, :].T
        b_p[0, cols] = b_all[rows]

    wlin_row = np.zeros((1, HP), np.float32)
    wlin_row[0, :HIDDEN] = w_lin[0, :]

    return (jnp.asarray(wih_row, jnp.float32),   # VPU rank-1 projection row
            jnp.asarray(whh_p, jnp.bfloat16),    # per-step recurrent matmul -> bf16 MXU
            jnp.asarray(b_p, jnp.float32),
            jnp.asarray(wlin_row, jnp.float32),  # VPU/XLU final linear row
            jnp.asarray(b_lin, jnp.float32))


@jax.jit
def lstm_model_forward(x, wih_row, whh_p, b_p, wlin_row, blin):
    """Equivalent of LSTMModel.forward(input_seq): returns predictions[-1].

    x: (SEQ_LEN,) float32 raw input sequence (input_size=1, batch=1 implicit).
    Remaining args are the pre-padded params from prepare_params().
    """
    x_f32 = x.reshape(-1).astype(jnp.float32)    # no padding op needed anymore

    out = pl.pallas_call(
        lstm_kernel,
        out_shape=jax.ShapeDtypeStruct((1, 1), jnp.float32),
        in_specs=[
            pl.BlockSpec(memory_space=pltpu.MemorySpace.SMEM),   # x (scalars)
            pl.BlockSpec(memory_space=pltpu.MemorySpace.VMEM),   # wih_row
            pl.BlockSpec(memory_space=pltpu.MemorySpace.VMEM),   # whh
            pl.BlockSpec(memory_space=pltpu.MemorySpace.VMEM),   # bias row
            pl.BlockSpec(memory_space=pltpu.MemorySpace.VMEM),   # wlin_row
            pl.BlockSpec(memory_space=pltpu.MemorySpace.SMEM),   # blin
        ],
        out_specs=pl.BlockSpec(memory_space=pltpu.MemorySpace.VMEM),
    )(x_f32, wih_row, whh_p, b_p, wlin_row, blin)

    return out[0]                                # == predictions[-1], shape (1,)


def lstm_model_ref(x, w_ih, w_hh, b_ih, b_hh, w_lin, b_lin):
    """Pure-JAX f32 reference mirroring PyTorch nn.LSTM + Linear semantics."""
    x2 = x.reshape(-1, 1, INPUT_SIZE)

    def step(carry, x_t):
        h, c = carry
        gates = x_t @ w_ih.T + h @ w_hh.T + b_ih + b_hh
        i_g, f_g, g_g, o_g = jnp.split(gates, 4, axis=-1)    # PyTorch order i,f,g,o
        i_g = jax.nn.sigmoid(i_g)
        f_g = jax.nn.sigmoid(f_g)
        g_g = jnp.tanh(g_g)
        o_g = jax.nn.sigmoid(o_g)
        c = f_g * c + i_g * g_g
        h = o_g * jnp.tanh(c)
        return (h, c), h

    h0 = jnp.zeros((1, HIDDEN), jnp.float32)
    c0 = jnp.zeros((1, HIDDEN), jnp.float32)
    _, hs = lax.scan(step, (h0, c0), x2)
    preds = hs[:, 0, :] @ w_lin.T + b_lin
    return preds[-1]


if __name__ == "__main__":
    key = jax.random.PRNGKey(0)
    k_x, k_wih, k_whh, k_bih, k_bhh, k_wl, k_bl = jax.random.split(key, 7)

    # PyTorch-style uniform(-1/sqrt(H), 1/sqrt(H)) init.
    bound = 1.0 / np.sqrt(HIDDEN)
    w_ih = jax.random.uniform(k_wih, (4 * HIDDEN, INPUT_SIZE), jnp.float32, -bound, bound)
    w_hh = jax.random.uniform(k_whh, (4 * HIDDEN, HIDDEN), jnp.float32, -bound, bound)
    b_ih = jax.random.uniform(k_bih, (4 * HIDDEN,), jnp.float32, -bound, bound)
    b_hh = jax.random.uniform(k_bhh, (4 * HIDDEN,), jnp.float32, -bound, bound)
    w_lin = jax.random.uniform(k_wl, (OUTPUT_SIZE, HIDDEN), jnp.float32, -bound, bound)
    b_lin = jax.random.uniform(k_bl, (OUTPUT_SIZE,), jnp.float32, -bound, bound)

    # Input sequence (len 8, input_size=1, batch=1 implicit).
    x = jax.random.normal(k_x, (SEQ_LEN,), jnp.float32)

    # One-time padding / layout prep (hoisted out of the hot path).
    padded = prepare_params(w_ih, w_hh, b_ih, b_hh, w_lin, b_lin)

    out = lstm_model_forward(x, *padded)
    out = jax.block_until_ready(out)

    ref = lstm_model_ref(x, w_ih, w_hh, b_ih, b_hh, w_lin, b_lin)
    # Tolerance loosened vs pure-f32 because W_hh (and h at the matmul input)
    # are bf16; accumulation and all gate math stay f32.
    np.testing.assert_allclose(np.asarray(out), np.asarray(ref),
                               rtol=3e-2, atol=3e-2)
    print("KERNEL_OK")
</pallas_src>

<mosaic_0001>
module attributes {stable_mosaic.version = 11 : i64} {
  func.func @lstm_kernel(%arg0: memref<8xf32, #tpu.memory_space<smem>>, %arg1: memref<1x512xf32, #tpu.memory_space<vmem>>, %arg2: memref<128x512xbf16, #tpu.memory_space<vmem>>, %arg3: memref<1x512xf32, #tpu.memory_space<vmem>>, %arg4: memref<1x128xf32, #tpu.memory_space<vmem>>, %arg5: memref<1xf32, #tpu.memory_space<smem>>, %arg6: memref<1x1xf32, #tpu.memory_space<vmem>>) attributes {dimension_semantics = [], scalar_prefetch = 0 : i64, scratch_operands = 0 : i64, tpu.core_type = #tpu.core_type<tc>} {
    %c0 = arith.constant 0 : index
    %c0_0 = arith.constant 0 : index
    %0 = vector.load %arg1[%c0, %c0_0] : memref<1x512xf32, #tpu.memory_space<vmem>>, vector<1x512xf32>
    %c0_1 = arith.constant 0 : index
    %c0_2 = arith.constant 0 : index
    %1 = vector.load %arg3[%c0_1, %c0_2] : memref<1x512xf32, #tpu.memory_space<vmem>>, vector<1x512xf32>
    %cst = arith.constant 0.000000e+00 : f32
    %2 = vector.broadcast %cst : f32 to vector<1x128xf32>
    %cst_3 = arith.constant 0.000000e+00 : f32
    %3 = vector.broadcast %cst_3 : f32 to vector<1x128xf32>
    %c0_i32 = arith.constant 0 : i32
    %4 = arith.index_cast %c0_i32 : i32 to index
    %5 = memref.load %arg0[%4] : memref<8xf32, #tpu.memory_space<smem>>
    %6 = vector.broadcast %5 : f32 to vector<1x512xf32>
    %7 = arith.mulf %6, %0 : vector<1x512xf32>
    %8 = arith.addf %7, %1 : vector<1x512xf32>
    %9 = arith.truncf %2 : vector<1x128xf32> to vector<1x128xbf16>
    %c0_4 = arith.constant 0 : index
    %c0_5 = arith.constant 0 : index
    %10 = vector.load %arg2[%c0_4, %c0_5] : memref<128x512xbf16, #tpu.memory_space<vmem>>, vector<128x512xbf16>
    %cst_6 = arith.constant dense<0.000000e+00> : vector<1x512xf32>
    %11 = tpu.matmul %9, %10, %cst_6 {dimension_numbers = #tpu.dot_dimension_numbers<[1], [0], [0], [1], [0, 0, 1, 1], [], []>} : vector<1x128xbf16>, vector<128x512xbf16>, vector<1x512xf32> -> vector<1x512xf32>
    %12 = arith.addf %8, %11 : vector<1x512xf32>
    %13 = vector.extract_strided_slice %12 {offsets = [0, 0], sizes = [1, 384], strides = [1, 1]} : vector<1x512xf32> to vector<1x384xf32>
    %14 = arith.negf %13 : vector<1x384xf32>
    %15 = math.exp %14 : vector<1x384xf32>
    %cst_7 = arith.constant 1.000000e+00 : f32
    %16 = vector.broadcast %cst_7 : f32 to vector<1x384xf32>
    %17 = arith.addf %16, %15 : vector<1x384xf32>
    %18 = arith.divf %16, %17 : vector<1x384xf32>
    %19 = vector.extract_strided_slice %18 {offsets = [0, 0], sizes = [1, 128], strides = [1, 1]} : vector<1x384xf32> to vector<1x128xf32>
    %20 = vector.extract_strided_slice %18 {offsets = [0, 128], sizes = [1, 128], strides = [1, 1]} : vector<1x384xf32> to vector<1x128xf32>
    %21 = vector.extract_strided_slice %18 {offsets = [0, 256], sizes = [1, 128], strides = [1, 1]} : vector<1x384xf32> to vector<1x128xf32>
    %22 = vector.extract_strided_slice %12 {offsets = [0, 384], sizes = [1, 128], strides = [1, 1]} : vector<1x512xf32> to vector<1x128xf32>
    %23 = math.tanh %22 : vector<1x128xf32>
    %24 = arith.mulf %20, %3 : vector<1x128xf32>
    %25 = arith.mulf %19, %23 : vector<1x128xf32>
    %26 = arith.addf %24, %25 : vector<1x128xf32>
    %27 = math.tanh %26 : vector<1x128xf32>
    %28 = arith.mulf %21, %27 : vector<1x128xf32>
    %c1_i32 = arith.constant 1 : i32
    %29 = arith.index_cast %c1_i32 : i32 to index
    %30 = memref.load %arg0[%29] : memref<8xf32, #tpu.memory_space<smem>>
    %31 = vector.broadcast %30 : f32 to vector<1x512xf32>
    %32 = arith.mulf %31, %0 : vector<1x512xf32>
    %33 = arith.addf %32, %1 : vector<1x512xf32>
    %34 = arith.truncf %28 : vector<1x128xf32> to vector<1x128xbf16>
    %c0_8 = arith.constant 0 : index
    %c0_9 = arith.constant 0 : index
    %35 = vector.load %arg2[%c0_8, %c0_9] : memref<128x512xbf16, #tpu.memory_space<vmem>>, vector<128x512xbf16>
    %cst_10 = arith.constant dense<0.000000e+00> : vector<1x512xf32>
    %36 = tpu.matmul %34, %35, %cst_10 {dimension_numbers = #tpu.dot_dimension_numbers<[1], [0], [0], [1], [0, 0, 1, 1], [], []>} : vector<1x128xbf16>, vector<128x512xbf16>, vector<1x512xf32> -> vector<1x512xf32>
    %37 = arith.addf %33, %36 : vector<1x512xf32>
    %38 = vector.extract_strided_slice %37 {offsets = [0, 0], sizes = [1, 384], strides = [1, 1]} : vector<1x512xf32> to vector<1x384xf32>
    %39 = arith.negf %38 : vector<1x384xf32>
    %40 = math.exp %39 : vector<1x384xf32>
    %cst_11 = arith.constant 1.000000e+00 : f32
    %41 = vector.broadcast %cst_11 : f32 to vector<1x384xf32>
    %42 = arith.addf %41, %40 : vector<1x384xf32>
    %43 = arith.divf %41, %42 : vector<1x384xf32>
    %44 = vector.extract_strided_slice %43 {offsets = [0, 0], sizes = [1, 128], strides = [1, 1]} : vector<1x384xf32> to vector<1x128xf32>
    %45 = vector.extract_strided_slice %43 {offsets = [0, 128], sizes = [1, 128], strides = [1, 1]} : vector<1x384xf32> to vector<1x128xf32>
    %46 = vector.extract_strided_slice %43 {offsets = [0, 256], sizes = [1, 128], strides = [1, 1]} : vector<1x384xf32> to vector<1x128xf32>
    %47 = vector.extract_strided_slice %37 {offsets = [0, 384], sizes = [1, 128], strides = [1, 1]} : vector<1x512xf32> to vector<1x128xf32>
    %48 = math.tanh %47 : vector<1x128xf32>
    %49 = arith.mulf %45, %26 : vector<1x128xf32>
    %50 = arith.mulf %44, %48 : vector<1x128xf32>
    %51 = arith.addf %49, %50 : vector<1x128xf32>
    %52 = math.tanh %51 : vector<1x128xf32>
    %53 = arith.mulf %46, %52 : vector<1x128xf32>
    %c2_i32 = arith.constant 2 : i32
    %54 = arith.index_cast %c2_i32 : i32 to index
    %55 = memref.load %arg0[%54] : memref<8xf32, #tpu.memory_space<smem>>
    %56 = vector.broadcast %55 : f32 to vector<1x512xf32>
    %57 = arith.mulf %56, %0 : vector<1x512xf32>
    %58 = arith.addf %57, %1 : vector<1x512xf32>
    %59 = arith.truncf %53 : vector<1x128xf32> to vector<1x128xbf16>
    %c0_12 = arith.constant 0 : index
    %c0_13 = arith.constant 0 : index
    %60 = vector.load %arg2[%c0_12, %c0_13] : memref<128x512xbf16, #tpu.memory_space<vmem>>, vector<128x512xbf16>
    %cst_14 = arith.constant dense<0.000000e+00> : vector<1x512xf32>
    %61 = tpu.matmul %59, %60, %cst_14 {dimension_numbers = #tpu.dot_dimension_numbers<[1], [0], [0], [1], [0, 0, 1, 1], [], []>} : vector<1x128xbf16>, vector<128x512xbf16>, vector<1x512xf32> -> vector<1x512xf32>
    %62 = arith.addf %58, %61 : vector<1x512xf32>
    %63 = vector.extract_strided_slice %62 {offsets = [0, 0], sizes = [1, 384], strides = [1, 1]} : vector<1x512xf32> to vector<1x384xf32>
    %64 = arith.negf %63 : vector<1x384xf32>
    %65 = math.exp %64 : vector<1x384xf32>
    %cst_15 = arith.constant 1.000000e+00 : f32
    %66 = vector.broadcast %cst_15 : f32 to vector<1x384xf32>
    %67 = arith.addf %66, %65 : vector<1x384xf32>
    %68 = arith.divf %66, %67 : vector<1x384xf32>
    %69 = vector.extract_strided_slice %68 {offsets = [0, 0], sizes = [1, 128], strides = [1, 1]} : vector<1x384xf32> to vector<1x128xf32>
    %70 = vector.extract_strided_slice %68 {offsets = [0, 128], sizes = [1, 128], strides = [1, 1]} : vector<1x384xf32> to vector<1x128xf32>
    %71 = vector.extract_strided_slice %68 {offsets = [0, 256], sizes = [1, 128], strides = [1, 1]} : vector<1x384xf32> to vector<1x128xf32>
    %72 = vector.extract_strided_slice %62 {offsets = [0, 384], sizes = [1, 128], strides = [1, 1]} : vector<1x512xf32> to vector<1x128xf32>
    %73 = math.tanh %72 : vector<1x128xf32>
    %74 = arith.mulf %70, %51 : vector<1x128xf32>
    %75 = arith.mulf %69, %73 : vector<1x128xf32>
    %76 = arith.addf %74, %75 : vector<1x128xf32>
    %77 = math.tanh %76 : vector<1x128xf32>
    %78 = arith.mulf %71, %77 : vector<1x128xf32>
    %c3_i32 = arith.constant 3 : i32
    %79 = arith.index_cast %c3_i32 : i32 to index
    %80 = memref.load %arg0[%79] : memref<8xf32, #tpu.memory_space<smem>>
    %81 = vector.broadcast %80 : f32 to vector<1x512xf32>
    %82 = arith.mulf %81, %0 : vector<1x512xf32>
    %83 = arith.addf %82, %1 : vector<1x512xf32>
    %84 = arith.truncf %78 : vector<1x128xf32> to vector<1x128xbf16>
    %c0_16 = arith.constant 0 : index
    %c0_17 = arith.constant 0 : index
    %85 = vector.load %arg2[%c0_16, %c0_17] : memref<128x512xbf16, #tpu.memory_space<vmem>>, vector<128x512xbf16>
    %cst_18 = arith.constant dense<0.000000e+00> : vector<1x512xf32>
    %86 = tpu.matmul %84, %85, %cst_18 {dimension_numbers = #tpu.dot_dimension_numbers<[1], [0], [0], [1], [0, 0, 1, 1], [], []>} : vector<1x128xbf16>, vector<128x512xbf16>, vector<1x512xf32> -> vector<1x512xf32>
    %87 = arith.addf %83, %86 : vector<1x512xf32>
    %88 = vector.extract_strided_slice %87 {offsets = [0, 0], sizes = [1, 384], strides = [1, 1]} : vector<1x512xf32> to vector<1x384xf32>
    %89 = arith.negf %88 : vector<1x384xf32>
    %90 = math.exp %89 : vector<1x384xf32>
    %cst_19 = arith.constant 1.000000e+00 : f32
    %91 = vector.broadcast %cst_19 : f32 to vector<1x384xf32>
    %92 = arith.addf %91, %90 : vector<1x384xf32>
    %93 = arith.divf %91, %92 : vector<1x384xf32>
    %94 = vector.extract_strided_slice %93 {offsets = [0, 0], sizes = [1, 128], strides = [1, 1]} : vector<1x384xf32> to vector<1x128xf32>
    %95 = vector.extract_strided_slice %93 {offsets = [0, 128], sizes = [1, 128], strides = [1, 1]} : vector<1x384xf32> to vector<1x128xf32>
    %96 = vector.extract_strided_slice %93 {offsets = [0, 256], sizes = [1, 128], strides = [1, 1]} : vector<1x384xf32> to vector<1x128xf32>
    %97 = vector.extract_strided_slice %87 {offsets = [0, 384], sizes = [1, 128], strides = [1, 1]} : vector<1x512xf32> to vector<1x128xf32>
    %98 = math.tanh %97 : vector<1x128xf32>
    %99 = arith.mulf %95, %76 : vector<1x128xf32>
    %100 = arith.mulf %94, %98 : vector<1x128xf32>
    %101 = arith.addf %99, %100 : vector<1x128xf32>
    %102 = math.tanh %101 : vector<1x128xf32>
    %103 = arith.mulf %96, %102 : vector<1x128xf32>
    %c4_i32 = arith.constant 4 : i32
    %104 = arith.index_cast %c4_i32 : i32 to index
    %105 = memref.load %arg0[%104] : memref<8xf32, #tpu.memory_space<smem>>
    %106 = vector.broadcast %105 : f32 to vector<1x512xf32>
    %107 = arith.mulf %106, %0 : vector<1x512xf32>
    %108 = arith.addf %107, %1 : vector<1x512xf32>
    %109 = arith.truncf %103 : vector<1x128xf32> to vector<1x128xbf16>
    %c0_20 = arith.constant 0 : index
    %c0_21 = arith.constant 0 : index
    %110 = vector.load %arg2[%c0_20, %c0_21] : memref<128x512xbf16, #tpu.memory_space<vmem>>, vector<128x512xbf16>
    %cst_22 = arith.constant dense<0.000000e+00> : vector<1x512xf32>
    %111 = tpu.matmul %109, %110, %cst_22 {dimension_numbers = #tpu.dot_dimension_numbers<[1], [0], [0], [1], [0, 0, 1, 1], [], []>} : vector<1x128xbf16>, vector<128x512xbf16>, vector<1x512xf32> -> vector<1x512xf32>
    %112 = arith.addf %108, %111 : vector<1x512xf32>
    %113 = vector.extract_strided_slice %112 {offsets = [0, 0], sizes = [1, 384], strides = [1, 1]} : vector<1x512xf32> to vector<1x384xf32>
    %114 = arith.negf %113 : vector<1x384xf32>
    %115 = math.exp %114 : vector<1x384xf32>
    %cst_23 = arith.constant 1.000000e+00 : f32
    %116 = vector.broadcast %cst_23 : f32 to vector<1x384xf32>
    %117 = arith.addf %116, %115 : vector<1x384xf32>
    %118 = arith.divf %116, %117 : vector<1x384xf32>
    %119 = vector.extract_strided_slice %118 {offsets = [0, 0], sizes = [1, 128], strides = [1, 1]} : vector<1x384xf32> to vector<1x128xf32>
    %120 = vector.extract_strided_slice %118 {offsets = [0, 128], sizes = [1, 128], strides = [1, 1]} : vector<1x384xf32> to vector<1x128xf32>
    %121 = vector.extract_strided_slice %118 {offsets = [0, 256], sizes = [1, 128], strides = [1, 1]} : vector<1x384xf32> to vector<1x128xf32>
    %122 = vector.extract_strided_slice %112 {offsets = [0, 384], sizes = [1, 128], strides = [1, 1]} : vector<1x512xf32> to vector<1x128xf32>
    %123 = math.tanh %122 : vector<1x128xf32>
    %124 = arith.mulf %120, %101 : vector<1x128xf32>
    %125 = arith.mulf %119, %123 : vector<1x128xf32>
    %126 = arith.addf %124, %125 : vector<1x128xf32>
    %127 = math.tanh %126 : vector<1x128xf32>
    %128 = arith.mulf %121, %127 : vector<1x128xf32>
    %c5_i32 = arith.constant 5 : i32
    %129 = arith.index_cast %c5_i32 : i32 to index
    %130 = memref.load %arg0[%129] : memref<8xf32, #tpu.memory_space<smem>>
    %131 = vector.broadcast %130 : f32 to vector<1x512xf32>
    %132 = arith.mulf %131, %0 : vector<1x512xf32>
    %133 = arith.addf %132, %1 : vector<1x512xf32>
    %134 = arith.truncf %128 : vector<1x128xf32> to vector<1x128xbf16>
    %c0_24 = arith.constant 0 : index
    %c0_25 = arith.constant 0 : index
    %135 = vector.load %arg2[%c0_24, %c0_25] : memref<128x512xbf16, #tpu.memory_space<vmem>>, vector<128x512xbf16>
    %cst_26 = arith.constant dense<0.000000e+00> : vector<1x512xf32>
    %136 = tpu.matmul %134, %135, %cst_26 {dimension_numbers = #tpu.dot_dimension_numbers<[1], [0], [0], [1], [0, 0, 1, 1], [], []>} : vector<1x128xbf16>, vector<128x512xbf16>, vector<1x512xf32> -> vector<1x512xf32>
    %137 = arith.addf %133, %136 : vector<1x512xf32>
    %138 = vector.extract_strided_slice %137 {offsets = [0, 0], sizes = [1, 384], strides = [1, 1]} : vector<1x512xf32> to vector<1x384xf32>
    %139 = arith.negf %138 : vector<1x384xf32>
    %140 = math.exp %139 : vector<1x384xf32>
    %cst_27 = arith.constant 1.000000e+00 : f32
    %141 = vector.broadcast %cst_27 : f32 to vector<1x384xf32>
    %142 = arith.addf %141, %140 : vector<1x384xf32>
    %143 = arith.divf %141, %142 : vector<1x384xf32>
    %144 = vector.extract_strided_slice %143 {offsets = [0, 0], sizes = [1, 128], strides = [1, 1]} : vector<1x384xf32> to vector<1x128xf32>
    %145 = vector.extract_strided_slice %143 {offsets = [0, 128], sizes = [1, 128], strides = [1, 1]} : vector<1x384xf32> to vector<1x128xf32>
    %146 = vector.extract_strided_slice %143 {offsets = [0, 256], sizes = [1, 128], strides = [1, 1]} : vector<1x384xf32> to vector<1x128xf32>
    %147 = vector.extract_strided_slice %137 {offsets = [0, 384], sizes = [1, 128], strides = [1, 1]} : vector<1x512xf32> to vector<1x128xf32>
    %148 = math.tanh %147 : vector<1x128xf32>
    %149 = arith.mulf %145, %126 : vector<1x128xf32>
    %150 = arith.mulf %144, %148 : vector<1x128xf32>
    %151 = arith.addf %149, %150 : vector<1x128xf32>
    %152 = math.tanh %151 : vector<1x128xf32>
    %153 = arith.mulf %146, %152 : vector<1x128xf32>
    %c6_i32 = arith.constant 6 : i32
    %154 = arith.index_cast %c6_i32 : i32 to index
    %155 = memref.load %arg0[%154] : memref<8xf32, #tpu.memory_space<smem>>
    %156 = vector.broadcast %155 : f32 to vector<1x512xf32>
    %157 = arith.mulf %156, %0 : vector<1x512xf32>
    %158 = arith.addf %157, %1 : vector<1x512xf32>
    %159 = arith.truncf %153 : vector<1x128xf32> to vector<1x128xbf16>
    %c0_28 = arith.constant 0 : index
    %c0_29 = arith.constant 0 : index
    %160 = vector.load %arg2[%c0_28, %c0_29] : memref<128x512xbf16, #tpu.memory_space<vmem>>, vector<128x512xbf16>
    %cst_30 = arith.constant dense<0.000000e+00> : vector<1x512xf32>
    %161 = tpu.matmul %159, %160, %cst_30 {dimension_numbers = #tpu.dot_dimension_numbers<[1], [0], [0], [1], [0, 0, 1, 1], [], []>} : vector<1x128xbf16>, vector<128x512xbf16>, vector<1x512xf32> -> vector<1x512xf32>
    %162 = arith.addf %158, %161 : vector<1x512xf32>
    %163 = vector.extract_strided_slice %162 {offsets = [0, 0], sizes = [1, 384], strides = [1, 1]} : vector<1x512xf32> to vector<1x384xf32>
    %164 = arith.negf %163 : vector<1x384xf32>
    %165 = math.exp %164 : vector<1x384xf32>
    %cst_31 = arith.constant 1.000000e+00 : f32
    %166 = vector.broadcast %cst_31 : f32 to vector<1x384xf32>
    %167 = arith.addf %166, %165 : vector<1x384xf32>
    %168 = arith.divf %166, %167 : vector<1x384xf32>
    %169 = vector.extract_strided_slice %168 {offsets = [0, 0], sizes = [1, 128], strides = [1, 1]} : vector<1x384xf32> to vector<1x128xf32>
    %170 = vector.extract_strided_slice %168 {offsets = [0, 128], sizes = [1, 128], strides = [1, 1]} : vector<1x384xf32> to vector<1x128xf32>
    %171 = vector.extract_strided_slice %168 {offsets = [0, 256], sizes = [1, 128], strides = [1, 1]} : vector<1x384xf32> to vector<1x128xf32>
    %172 = vector.extract_strided_slice %162 {offsets = [0, 384], sizes = [1, 128], strides = [1, 1]} : vector<1x512xf32> to vector<1x128xf32>
    %173 = math.tanh %172 : vector<1x128xf32>
    %174 = arith.mulf %170, %151 : vector<1x128xf32>
    %175 = arith.mulf %169, %173 : vector<1x128xf32>
    %176 = arith.addf %174, %175 : vector<1x128xf32>
    %177 = math.tanh %176 : vector<1x128xf32>
    %178 = arith.mulf %171, %177 : vector<1x128xf32>
    %c7_i32 = arith.constant 7 : i32
    %179 = arith.index_cast %c7_i32 : i32 to index
    %180 = memref.load %arg0[%179] : memref<8xf32, #tpu.memory_space<smem>>
    %181 = vector.broadcast %180 : f32 to vector<1x512xf32>
    %182 = arith.mulf %181, %0 : vector<1x512xf32>
    %183 = arith.addf %182, %1 : vector<1x512xf32>
    %184 = arith.truncf %178 : vector<1x128xf32> to vector<1x128xbf16>
    %c0_32 = arith.constant 0 : index
    %c0_33 = arith.constant 0 : index
    %185 = vector.load %arg2[%c0_32, %c0_33] : memref<128x512xbf16, #tpu.memory_space<vmem>>, vector<128x512xbf16>
    %cst_34 = arith.constant dense<0.000000e+00> : vector<1x512xf32>
    %186 = tpu.matmul %184, %185, %cst_34 {dimension_numbers = #tpu.dot_dimension_numbers<[1], [0], [0], [1], [0, 0, 1, 1], [], []>} : vector<1x128xbf16>, vector<128x512xbf16>, vector<1x512xf32> -> vector<1x512xf32>
    %187 = arith.addf %183, %186 : vector<1x512xf32>
    %188 = vector.extract_strided_slice %187 {offsets = [0, 0], sizes = [1, 384], strides = [1, 1]} : vector<1x512xf32> to vector<1x384xf32>
    %189 = arith.negf %188 : vector<1x384xf32>
    %190 = math.exp %189 : vector<1x384xf32>
    %cst_35 = arith.constant 1.000000e+00 : f32
    %191 = vector.broadcast %cst_35 : f32 to vector<1x384xf32>
    %192 = arith.addf %191, %190 : vector<1x384xf32>
    %193 = arith.divf %191, %192 : vector<1x384xf32>
    %194 = vector.extract_strided_slice %193 {offsets = [0, 0], sizes = [1, 128], strides = [1, 1]} : vector<1x384xf32> to vector<1x128xf32>
    %195 = vector.extract_strided_slice %193 {offsets = [0, 128], sizes = [1, 128], strides = [1, 1]} : vector<1x384xf32> to vector<1x128xf32>
    %196 = vector.extract_strided_slice %193 {offsets = [0, 256], sizes = [1, 128], strides = [1, 1]} : vector<1x384xf32> to vector<1x128xf32>
    %197 = vector.extract_strided_slice %187 {offsets = [0, 384], sizes = [1, 128], strides = [1, 1]} : vector<1x512xf32> to vector<1x128xf32>
    %198 = math.tanh %197 : vector<1x128xf32>
    %199 = arith.mulf %195, %176 : vector<1x128xf32>
    %200 = arith.mulf %194, %198 : vector<1x128xf32>
    %201 = arith.addf %199, %200 : vector<1x128xf32>
    %202 = math.tanh %201 : vector<1x128xf32>
    %203 = arith.mulf %196, %202 : vector<1x128xf32>
    %c8_i32 = arith.constant 8 : i32
    %c0_36 = arith.constant 0 : index
    %c0_37 = arith.constant 0 : index
    %204 = vector.load %arg4[%c0_36, %c0_37] : memref<1x128xf32, #tpu.memory_space<vmem>>, vector<1x128xf32>
    %205 = arith.mulf %203, %204 : vector<1x128xf32>
    %cst_38 = arith.constant dense<0.000000e+00> : vector<1xf32>
    %206 = vector.multi_reduction <add>, %205, %cst_38 [1] : vector<1x128xf32> to vector<1xf32>
    %207 = vector.shape_cast %206 : vector<1xf32> to vector<1x1xf32>
    %c0_39 = arith.constant 0 : index
    %208 = memref.load %arg5[%c0_39] : memref<1xf32, #tpu.memory_space<smem>>
    %209 = vector.broadcast %208 : f32 to vector<1x1xf32>
    %210 = arith.addf %207, %209 : vector<1x1xf32>
    %c0_40 = arith.constant 0 : index
    %c0_41 = arith.constant 0 : index
    %211 = vector.load %arg6[%c0_40, %c0_41] : memref<1x1xf32, #tpu.memory_space<vmem>>, vector<1x1xf32>
    tpu.vector_store %arg6[%c0_40, %c0_41], %210 {strides = array<i32>} : memref<1x1xf32, #tpu.memory_space<vmem>>, vector<1x1xf32>,
    return
  }
}

</mosaic_0001>

<bundles_post_ra>
// kernel: lstm_model_forward.1
= control target key start
LH: loop header
LB: loop body
LE: loop exit
PB: predicated region body
PF: predicated region fallthrough
CT: control target
= control target key end

     0   :  { %12 = vsyncpa [#allocation6], 0  ;;  %s1899_s0 = inlined_call_operand.hbm [shape: f32[8], index: 0, kind: input, shape index: {}]   ;;  %s1900_s1 = inlined_call_operand.hbm [shape: f32[1,512], index: 1, kind: input, shape index: {}]   ;;  %s1901_s2 = inlined_call_operand.hbm [shape: bf16[128,512], index: 2, kind: input, shape index: {}]   ;;  %s1902_s3 = inlined_call_operand.vmem [shape: f32[1,512], index: 3, kind: input, shape index: {}]   ;;  %s1903_s4 = inlined_call_operand.vmem [shape: f32[1,128], index: 4, kind: input, shape index: {}]   ;;  %s1904_s5 = inlined_call_operand.<no memory space> [shape: f32[1], index: 5, kind: input, shape index: {}]   ;;  %s1905_s6 = inlined_call_operand.hbm [shape: f32[1,1], index: 6, kind: output, shape index: {}]  }
   0x1   :  { %13 = vsyncpa [#allocation4], 0 }
   0x2   :  { %14 = vsyncpa [#allocation9], 0 }
   0x3   :  { %15 = vsyncpa [#allocation5], 0  ;;  %s21_s23 = sshll.u32 %s1899_s0, 4  ;;  %s30_s26 = sshll.u32 %s1900_s1, 4  ;;  %s22_s23 = int_to_ptr.hbm [resolvable:$true] %s21_s23  ;;  %s31_s26 = int_to_ptr.hbm [resolvable:$true] %s30_s26 }
   0x4   :  { %s1450_s27 = smov [#allocation3]   ;;  %s1451_s28 = smov [#allocation7]  }
   0x5   :  { %24 = dma.hbm_to_smem %s22_s23, 16, %s1450_s27, [#allocation6]  }
   0x6   :  { %s32_s29 = sshll.u32 %s1451_s28, 4  ;;  %s40_s8 = sshll.u32 %s1901_s2, 4  ;;  %s33_s29 = int_to_ptr.vmem [resolvable:$true] %s32_s29  ;;  %s41_s8 = int_to_ptr.hbm [resolvable:$true] %s40_s8 }
   0x7   :  { %35 = dma.hbm_to_vmem [thread:$0]  %s31_s26, 64, %s33_s29, [#allocation4]  }
   0x8   :  { %s1452_s9 = smov [#allocation8]   ;;  %s1453_s0 = smov 256  }
   0x9   :  { %s42_s10 = sshll.u32 %s1452_s9, 4  ;;  %s1454_s11 = smov 16   ;;  %s43_s10 = int_to_ptr.vmem [resolvable:$true] %s42_s10 }
   0xa   :  { %48 = dma.hbm_to_vmem [thread:$0]  %s41_s8, 4096, %s43_s10, [#allocation9], %s1453_s0, %s1453_s0, %s1454_s11  }
   0xb   :  { %1442 = dma.done.wait [#allocation6], 16  }
   0xc   :  { %1443 = vsyncadd [#allocation6], 4294967280 }
   0xd   :  { %1444 = dma.done.wait [#allocation4], 64  }
   0xe   :  { %1445 = vsyncadd [#allocation4], 4294967232 }
   0xf   :  { %1446 = dma.done.wait [#allocation9], 4096  }
  0x10   :  { %1447 = vsyncadd [#allocation9], 4294963200 }
  0x11   :  { %67 = sfence }
  0x12   :  { %v1224_v0 = vld [vmem:[#allocation8 + $0xe0] sm:$0xf]  ;;  %v1283_v1 = vld [vmem:[#allocation8 + $0xec] sm:$0xf0]  ;;  %v1281_v2 = vld [vmem:[#allocation8 + $0xe4] sm:$0xf] }
  0x13   :  { %v1501_v3 = vor.u32 %v1283_v1, %v1224_v0  ;;  %v1226_v4 = vld [vmem:[#allocation8 + $0xf0] sm:$0xf0]  ;;  %v1232_v5 = vld [vmem:[#allocation8 + $0xe8] sm:$0xf]  ;;  %v1284_v6 = vld [vmem:[#allocation8 + $0xf4] sm:$0xf0] }
  0x14   :  { %v1503_v7 = vor.u32 %v1281_v2, %v1226_v4  ;;  %v1505_v8 = vor.u32 %v1284_v6, %v1232_v5  ;;  %v1282_v9 = vld [vmem:[#allocation8 + $0xec] sm:$0xf]  ;;  %v1234_v10 = vld [vmem:[#allocation8 + $0xf8] sm:$0xf0]  ;;  %v1208_v11 = vld [vmem:[#allocation8 + $0xc0] sm:$0xf] }
  0x15   :  { %267 = vmatpush.bf16.msra.mxu0 %v1501_v3  ;;  %v1508_v12 = vor.u32 %v1282_v9, %v1234_v10  ;;  %v1279_v13 = vld [vmem:[#allocation8 + $0xcc] sm:$0xf0]  ;;  %v1277_v14 = vld [vmem:[#allocation8 + $0xc4] sm:$0xf]  ;;  %v1210_v15 = vld [vmem:[#allocation8 + $0xd0] sm:$0xf0] }
  0x16   :  { %280 = vmatpush.bf16.msra.mxu1 %v1503_v7  ;;  %293 = vmatpush.bf16.msra.mxu2 %v1505_v8  ;;  %v1512_v16 = vor.u32 %v1279_v13, %v1208_v11  ;;  %v1514_v17 = vor.u32 %v1277_v14, %v1210_v15  ;;  %v1216_v18 = vld [vmem:[#allocation8 + $0xc8] sm:$0xf]  ;;  %v1280_v19 = vld [vmem:[#allocation8 + $0xd4] sm:$0xf0]  ;;  %v1278_v20 = vld [vmem:[#allocation8 + $0xcc] sm:$0xf] }
  0x17   :  { %306 = vmatpush.bf16.msra.mxu3 %v1508_v12  ;;  %v1517_v21 = vor.u32 %v1280_v19, %v1216_v18  ;;  %v1218_v22 = vld [vmem:[#allocation8 + $0xd8] sm:$0xf0]  ;;  %v1192_v23 = vld [vmem:[#allocation8 + $0xa0] sm:$0xf]  ;;  %v1275_v24 = vld [vmem:[#allocation8 + $0xac] sm:$0xf0] }
  0x18   :  { %v1519_v25 = vor.u32 %v1278_v20, %v1218_v22  ;;  %v1273_v26 = vld [vmem:[#allocation8 + $0xa4] sm:$0xf]  ;;  %v1194_v27 = vld [vmem:[#allocation8 + $0xb0] sm:$0xf0]  ;;  %v1200_v28 = vld [vmem:[#allocation8 + $0xa8] sm:$0xf]  ;;  %v1522_v29 = vor.u32 %v1275_v24, %v1192_v23 }
  0x19   :  { %268 = vmatpush.bf16.msra.mxu0 %v1512_v16  ;;  %v1276_v30 = vld [vmem:[#allocation8 + $0xb4] sm:$0xf0]  ;;  %v1274_v31 = vld [vmem:[#allocation8 + $0xac] sm:$0xf]  ;;  %v1202_v32 = vld [vmem:[#allocation8 + $0xb8] sm:$0xf0]  ;;  %v1526_v33 = vor.u32 %v1273_v26, %v1194_v27 }
  0x1a   :  { %281 = vmatpush.bf16.msra.mxu1 %v1514_v17  ;;  %294 = vmatpush.bf16.msra.mxu2 %v1517_v21  ;;  %v1528_v34 = vor.u32 %v1276_v30, %v1200_v28  ;;  %v1176_v35 = vld [vmem:[#allocation8 + $0x80] sm:$0xf]  ;;  %v1271_v36 = vld [vmem:[#allocation8 + $0x8c] sm:$0xf0]  ;;  %v1269_v37 = vld [vmem:[#allocation8 + $0x84] sm:$0xf]  ;;  %v1531_v38 = vor.u32 %v1274_v31, %v1202_v32 }
  0x1b   :  { %307 = vmatpush.bf16.msra.mxu3 %v1519_v25  ;;  %v1178_v39 = vld [vmem:[#allocation8 + $0x90] sm:$0xf0]  ;;  %v1184_v40 = vld [vmem:[#allocation8 + $0x88] sm:$0xf]  ;;  %v1272_v41 = vld [vmem:[#allocation8 + $0x94] sm:$0xf0]  ;;  %v1534_v44 = vor.u32 %v1271_v36, %v1176_v35 }
  0x1c   :  { %v1270_v42 = vld [vmem:[#allocation8 + $0x8c] sm:$0xf]  ;;  %v1186_v43 = vld [vmem:[#allocation8 + $0x98] sm:$0xf0]  ;;  %v1538_v45 = vor.u32 %v1269_v37, %v1178_v39  ;;  %v1540_v46 = vor.u32 %v1272_v41, %v1184_v40  ;;  %v1160_v47 = vld [vmem:[#allocation8 + $0x60] sm:$0xf] }
  0x1d   :  { %269 = vmatpush.bf16.msra.mxu0 %v1522_v29  ;;  %v1267_v48 = vld [vmem:[#allocation8 + $0x6c] sm:$0xf0]  ;;  %v1265_v49 = vld [vmem:[#allocation8 + $0x64] sm:$0xf]  ;;  %v1543_v50 = vor.u32 %v1270_v42, %v1186_v43  ;;  %v1162_v51 = vld [vmem:[#allocation8 + $0x70] sm:$0xf0] }
  0x1e   :  { %282 = vmatpush.bf16.msra.mxu1 %v1526_v33  ;;  %295 = vmatpush.bf16.msra.mxu2 %v1528_v34  ;;  %v1168_v52 = vld [vmem:[#allocation8 + $0x68] sm:$0xf]  ;;  %v1268_v53 = vld [vmem:[#allocation8 + $0x74] sm:$0xf0]  ;;  %v1266_v54 = vld [vmem:[#allocation8 + $0x6c] sm:$0xf]  ;;  %v1546_v56 = vor.u32 %v1267_v48, %v1160_v47  ;;  %v1550_v57 = vor.u32 %v1265_v49, %v1162_v51 }
  0x1f   :  { %308 = vmatpush.bf16.msra.mxu3 %v1531_v38  ;;  %v1170_v55 = vld [vmem:[#allocation8 + $0x78] sm:$0xf0]  ;;  %v1552_v58 = vor.u32 %v1268_v53, %v1168_v52  ;;  %v1144_v59 = vld [vmem:[#allocation8 + $0x40] sm:$0xf]  ;;  %v1263_v60 = vld [vmem:[#allocation8 + $0x4c] sm:$0xf0] }
  0x20   :  { %v1261_v61 = vld [vmem:[#allocation8 + $0x44] sm:$0xf]  ;;  %v1555_v62 = vor.u32 %v1266_v54, %v1170_v55  ;;  %v1146_v63 = vld [vmem:[#allocation8 + $0x50] sm:$0xf0]  ;;  %v1152_v0 = vld [vmem:[#allocation8 + $0x48] sm:$0xf]  ;;  %v1558_v5 = vor.u32 %v1263_v60, %v1144_v59 }
  0x21   :  { %270 = vmatpush.bf16.msra.mxu0 %v1534_v44  ;;  %v1264_v1 = vld [vmem:[#allocation8 + $0x54] sm:$0xf0]  ;;  %v1262_v2 = vld [vmem:[#allocation8 + $0x4c] sm:$0xf]  ;;  %v1154_v4 = vld [vmem:[#allocation8 + $0x58] sm:$0xf0]  ;;  %v1562_v6 = vor.u32 %v1261_v61, %v1146_v63 }
  0x22   :  { %283 = vmatpush.bf16.msra.mxu1 %v1538_v45  ;;  %296 = vmatpush.bf16.msra.mxu2 %v1540_v46  ;;  %v1564_v9 = vor.u32 %v1264_v1, %v1152_v0  ;;  %v1128_v10 = vld [vmem:[#allocation8 + $0x20] sm:$0xf]  ;;  %v1259_v11 = vld [vmem:[#allocation8 + $0x2c] sm:$0xf0]  ;;  %v1257_v13 = vld [vmem:[#allocation8 + $0x24] sm:$0xf]  ;;  %v1567_v14 = vor.u32 %v1262_v2, %v1154_v4 }
  0x23   :  { %309 = vmatpush.bf16.msra.mxu3 %v1543_v50  ;;  %v1130_v15 = vld [vmem:[#allocation8 + $0x30] sm:$0xf0]  ;;  %v1136_v18 = vld [vmem:[#allocation8 + $0x28] sm:$0xf]  ;;  %v1260_v19 = vld [vmem:[#allocation8 + $0x34] sm:$0xf0]  ;;  %v1570_v23 = vor.u32 %v1259_v11, %v1128_v10 }
  0x24   :  { %v1258_v20 = vld [vmem:[#allocation8 + $0x2c] sm:$0xf]  ;;  %v1138_v22 = vld [vmem:[#allocation8 + $0x38] sm:$0xf0]  ;;  %v1574_v24 = vor.u32 %v1257_v13, %v1130_v15  ;;  %v1576_v26 = vor.u32 %v1260_v19, %v1136_v18  ;;  %v1112_v27 = vld [vmem:[#allocation8] sm:$0xf] }
  0x25   :  { %271 = vmatpush.bf16.msra.mxu0 %v1546_v56  ;;  %v1255_v28 = vld [vmem:[#allocation8 + $0xc] sm:$0xf0]  ;;  %v1253_v30 = vld [vmem:[#allocation8 + $0x4] sm:$0xf]  ;;  %v1579_v31 = vor.u32 %v1258_v20, %v1138_v22  ;;  %v1114_v32 = vld [vmem:[#allocation8 + $0x10] sm:$0xf0] }
  0x26   :  { %284 = vmatpush.bf16.msra.mxu1 %v1550_v57  ;;  %297 = vmatpush.bf16.msra.mxu2 %v1552_v58  ;;  %v1120_v35 = vld [vmem:[#allocation8 + $0x8] sm:$0xf]  ;;  %v1256_v36 = vld [vmem:[#allocation8 + $0x14] sm:$0xf0]  ;;  %v1254_v37 = vld [vmem:[#allocation8 + $0xc] sm:$0xf]  ;;  %v1582_v40 = vor.u32 %v1255_v28, %v1112_v27  ;;  %v1586_v41 = vor.u32 %v1253_v30, %v1114_v32 }
  0x27   :  { %310 = vmatpush.bf16.msra.mxu3 %v1555_v62  ;;  %v1122_v39 = vld [vmem:[#allocation8 + $0x18] sm:$0xf0]  ;;  %v1588_v42 = vor.u32 %v1256_v36, %v1120_v35  ;;  %v1455_v47 = vmov 0   ;;  %s71_s1 = sld [smem:[#allocation3]]  ;;  %vm326_vm0 = vcmask 1040384   ;;  %vm328_vm1 = vcmask 1042434  }
  0x28   :  { %v1591_v43 = vor.u32 %v1254_v37, %v1122_v39  ;;  %v1661_v51 = vld [vmem:[#allocation7] sm:$0xf]  ;;  %vm330_vm2 = vcmask 1041408   ;;  %s1239_s13 = sld [smem:[#allocation3 + $0x1]]  ;;  %s1456_s25 = smov [#allocation10]  }
  0x29   :  { %272 = vmatpush.bf16.msra.mxu0 %v1558_v5  ;;  %v1667_v55 = vld [vmem:[%s1902_s3] sm:$0xf]  ;;  %s1241_s14 = sld [smem:[#allocation3 + $0x2]]  ;;  %s1096_s26 = sshll.u32 %s1456_s25, 4  ;;  %s1097_s26 = int_to_ptr.vmem [resolvable:$true] %s1096_s26 }
  0x2a   :  { %285 = vmatpush.bf16.msra.mxu1 %v1562_v6  ;;  %298 = vmatpush.bf16.msra.mxu2 %v1564_v9  ;;  %s1243_s15 = sld [smem:[#allocation3 + $0x3]]  ;;  %s1098_s29 = sshll.u32 %s1905_s6, 4  ;;  %s1099_s29 = int_to_ptr.hbm [resolvable:$true] %s1098_s29 }
  0x2b   :  { %311 = vmatpush.bf16.msra.mxu3 %v1567_v14  ;;  %s1245_s16 = sld [smem:[#allocation3 + $0x4]] }
  0x2c   :  { %s1247_s17 = sld [smem:[#allocation3 + $0x5]] }
  0x2d   :  { %273 = vmatpush.bf16.msra.mxu0 %v1570_v23  ;;  %v72_v52 = vstv %s71_s1  ;;  %s1249_s18 = sld [smem:[#allocation3 + $0x6]] }
  0x2e   :  { %286 = vmatpush.bf16.msra.mxu1 %v1574_v24  ;;  %299 = vmatpush.bf16.msra.mxu2 %v1576_v26  ;;  %v73_v54 = vmul.f32 %v72_v52, %v1661_v51  ;;  %s1251_s19 = sld [smem:[#allocation3 + $0x7]] }
  0x2f   :  { %312 = vmatpush.bf16.msra.mxu3 %v1579_v31 }
  0x30   :  { %v74_v1 = vadd.f32 %v73_v54, %v1667_v55 }
  0x31   :  { %274 = vmatpush.bf16.msra.mxu0 %v1582_v40 }
  0x32   :  { %287 = vmatpush.bf16.msra.mxu1 %v1586_v41  ;;  %300 = vmatpush.bf16.msra.mxu2 %v1588_v42 }
  0x33   :  { %313 = vmatpush.bf16.msra.mxu3 %v1591_v43 }
  0x34   :  { %275 = vmatmul.bf16.vlgmr.msra.gmra.mxu0 %v1455_v47 }
  0x35   :  { %372 = vmatpush.bf16.msrb.mxu0 %v1501_v3  ;;  %288 = vmatmul.bf16.vlgmr.msra.gmra.mxu1 %v1455_v47 }
  0x36   :  { %385 = vmatpush.bf16.msrb.mxu1 %v1503_v7  ;;  %301 = vmatmul.bf16.vlgmr.msra.gmra.mxu2 %v1455_v47 }
  0x37   :  { %314 = vmatmul.bf16.vlgmr.msra.gmra.mxu3 %v1455_v47  ;;  %398 = vmatpush.bf16.msrb.mxu2 %v1505_v8 }
  0x38   :  { %411 = vmatpush.bf16.msrb.mxu3 %v1508_v12 }
  0x39   :  { %373 = vmatpush.bf16.msrb.mxu0 %v1512_v16 }
  0x3a   :  { %386 = vmatpush.bf16.msrb.mxu1 %v1514_v17 }
  0x3b   :  { %399 = vmatpush.bf16.msrb.mxu2 %v1517_v21 }
  0x3c   :  { %412 = vmatpush.bf16.msrb.mxu3 %v1519_v25 }
  0x3d   :  { %374 = vmatpush.bf16.msrb.mxu0 %v1522_v29 }
  0x3e   :  { %387 = vmatpush.bf16.msrb.mxu1 %v1526_v33 }
  0x3f   :  { %400 = vmatpush.bf16.msrb.mxu2 %v1528_v34 }
  0x40   :  { %413 = vmatpush.bf16.msrb.mxu3 %v1531_v38 }
  0x41   :  { %375 = vmatpush.bf16.msrb.mxu0 %v1534_v44 }
  0x42   :  { %388 = vmatpush.bf16.msrb.mxu1 %v1538_v45 }
  0x43   :  { %401 = vmatpush.bf16.msrb.mxu2 %v1540_v46 }
  0x44   :  { %414 = vmatpush.bf16.msrb.mxu3 %v1543_v50 }
  0x45   :  { %376 = vmatpush.bf16.msrb.mxu0 %v1546_v56 }
  0x46   :  { %389 = vmatpush.bf16.msrb.mxu1 %v1550_v57 }
  0x47   :  { %402 = vmatpush.bf16.msrb.mxu2 %v1552_v58 }
  0x48   :  { %415 = vmatpush.bf16.msrb.mxu3 %v1555_v62 }
  0x49   :  { %377 = vmatpush.bf16.msrb.mxu0 %v1558_v5 }
  0x4a   :  { %390 = vmatpush.bf16.msrb.mxu1 %v1562_v6 }
  0x4b   :  { %403 = vmatpush.bf16.msrb.mxu2 %v1564_v9 }
  0x4c   :  { %416 = vmatpush.bf16.msrb.mxu3 %v1567_v14 }
  0x4d   :  { %378 = vmatpush.bf16.msrb.mxu0 %v1570_v23 }
  0x4e   :  { %391 = vmatpush.bf16.msrb.mxu1 %v1574_v24 }
  0x4f   :  { %404 = vmatpush.bf16.msrb.mxu2 %v1576_v26 }
  0x50   :  { %417 = vmatpush.bf16.msrb.mxu3 %v1579_v31 }
  0x51   :  { %379 = vmatpush.bf16.msrb.mxu0 %v1582_v40 }
  0x52   :  { %392 = vmatpush.bf16.msrb.mxu1 %v1586_v41 }
  0x53   :  { %405 = vmatpush.bf16.msrb.mxu2 %v1588_v42 }
  0x54   :  { %418 = vmatpush.bf16.msrb.mxu3 %v1591_v43 }
  0x55   :  { %474 = vmatpush.bf16.msra.mxu0 %v1501_v3 }
  0x56   :  { %487 = vmatpush.bf16.msra.mxu1 %v1503_v7 }
  0x57   :  { %500 = vmatpush.bf16.msra.mxu2 %v1505_v8 }
  0x58   :  { %513 = vmatpush.bf16.msra.mxu3 %v1508_v12 }
  0x59   :  { %475 = vmatpush.bf16.msra.mxu0 %v1512_v16 }
  0x5a   :  { %488 = vmatpush.bf16.msra.mxu1 %v1514_v17 }
  0x5b   :  { %501 = vmatpush.bf16.msra.mxu2 %v1517_v21 }
  0x5c   :  { %514 = vmatpush.bf16.msra.mxu3 %v1519_v25 }
  0x5d   :  { %476 = vmatpush.bf16.msra.mxu0 %v1522_v29 }
  0x5e   :  { %489 = vmatpush.bf16.msra.mxu1 %v1526_v33 }
  0x5f   :  { %502 = vmatpush.bf16.msra.mxu2 %v1528_v34 }
  0x60   :  { %515 = vmatpush.bf16.msra.mxu3 %v1531_v38 }
  0x61   :  { %477 = vmatpush.bf16.msra.mxu0 %v1534_v44 }
  0x62   :  { %490 = vmatpush.bf16.msra.mxu1 %v1538_v45 }
  0x63   :  { %503 = vmatpush.bf16.msra.mxu2 %v1540_v46 }
  0x64   :  { %516 = vmatpush.bf16.msra.mxu3 %v1543_v50 }
  0x65   :  { %478 = vmatpush.bf16.msra.mxu0 %v1546_v56 }
  0x66   :  { %491 = vmatpush.bf16.msra.mxu1 %v1550_v57 }
  0x67   :  { %504 = vmatpush.bf16.msra.mxu2 %v1552_v58 }
  0x68   :  { %517 = vmatpush.bf16.msra.mxu3 %v1555_v62 }
  0x69   :  { %479 = vmatpush.bf16.msra.mxu0 %v1558_v5 }
  0x6a   :  { %492 = vmatpush.bf16.msra.mxu1 %v1562_v6 }
  0x6b   :  { %505 = vmatpush.bf16.msra.mxu2 %v1564_v9 }
  0x6c   :  { %518 = vmatpush.bf16.msra.mxu3 %v1567_v14 }
  0x6d   :  { %480 = vmatpush.bf16.msra.mxu0 %v1570_v23 }
  0x6e   :  { %493 = vmatpush.bf16.msra.mxu1 %v1574_v24 }
  0x6f   :  { %506 = vmatpush.bf16.msra.mxu2 %v1576_v26 }
  0x70   :  { %519 = vmatpush.bf16.msra.mxu3 %v1579_v31 }
  0x71   :  { %481 = vmatpush.bf16.msra.mxu0 %v1582_v40 }
  0x72   :  { %494 = vmatpush.bf16.msra.mxu1 %v1586_v41 }
  0x73   :  { %507 = vmatpush.bf16.msra.mxu2 %v1588_v42 }
  0x74   :  { %520 = vmatpush.bf16.msra.mxu3 %v1591_v43 }
  0xb1   :  { %v276_v48 = vpop.f32.mrf.mxu0 }
  0xb2   :  { %v289_v49 = vpop.f32.mrf.mxu1 }
  0xb3   :  { %v323_v53 = vrot.slane %v289_v49, 7 }
  0xb5   :  { %v327_v0 = vsel %vm326_vm0, %v276_v48, %v323_v53 }
  0xb9   :  { %v302_v59 = vpop.f32.mrf.mxu2  ;;  %v278_v63 = vpop.f32.mrf.mxu0 }
  0xba   :  { %v324_v60 = vrot.slane %v302_v59, 6  ;;  %v315_v61 = vpop.f32.mrf.mxu3  ;;  %v291_v4 = vpop.f32.mrf.mxu1 }
  0xbb   :  { %v325_v2 = vrot.slane %v315_v61, 5 }
  0xbd   :  { %v329_v10 = vsel %vm328_vm1, %v324_v60, %v325_v2 }
  0xbe   :  { %v331_v11 = vsel %vm330_vm2, %v327_v0, %v329_v10  ;;  %v368_v10 = vstv %s1239_s13 }
  0xbf   :  { %v333_v13 = vadd.f32 %v331_v11, %v74_v1  ;;  %v369_v11 = vmul.f32 %v368_v10, %v1661_v51 }
  0xc1   :  { %v1238_v15 = vmul.f32 -1.442695, %v333_v13  ;;  %v304_v18 = vpop.f32.mrf.mxu2  ;;  %v354_v30 = vrot.slane %v333_v13, 3 }
  0xc2   :  { %v317_v19 = vpop.f32.mrf.mxu3 }
  0xc3   :  { %1292 = vpow2.f32 %v1238_v15 }
  0xc9   :  { %v1293_v20 = vpop.eup %1292 }
  0xca   :  { %v337_v22 = vadd.f32 1.0, %v1293_v20  ;;  %v370_v20 = vadd.f32 %v369_v11, %v1667_v55 }
  0xcc   :  { %1294 = vrcp.f32 %v337_v22  ;;  %v349_v35 = vand.u32 2147483648, %v337_v22  ;;  %v347_v37 = vand.u32 2147483647, %v337_v22  ;;  %vm343_vm4 = vweird.f32 %v337_v22 }
  0xcd   :  { %1296 = vtanh.f32 %v354_v30 }
  0xce   :  { %v350_v47 = vor.u32 1.1754944e-38, %v349_v35  ;;  %vm348_vm6 = vcmp.eq.f32.partialorder %v347_v37, 8.507059e+37 }
  0xd2   :  { %v1295_v27 = vpop.eup %1294 }
  0xd3   :  { %v339_v28 = vmul.f32 %v1295_v27, %v337_v22  ;;  %vm344_vm3 = vweird.f32 %v1295_v27  ;;  %v1297_v53 = vpop.eup %1296 }
  0xd4   :  { %vm345_vm5 = vmor %vm343_vm4, %vm344_vm3 }
  0xd5   :  { %v340_v32 = vsub.f32 1.0, %v339_v28 }
  0xd7   :  { %v341_v36 = vmul.f32 %v1295_v27, %v340_v32 }
  0xd9   :  { %v342_v39 = vadd.f32 %v1295_v27, %v341_v36 }
  0xdb   :  { %v346_v48 = vsel %vm345_vm5, %v1295_v27, %v342_v39 }
  0xdc   :  { %v351_v49 = vsel %vm348_vm6, %v350_v47, %v346_v48 }
  0xdd   :  { %v358_v52 = vrot.slane %v351_v49, 1  ;;  %v361_v59 = vmul.f32 %v1297_v53, %v351_v49  ;;  %v364_v61 = vrot.slane %v351_v49, 2 }
  0xdf   :  { %v360_v54 = vmul.f32 0.0, %v358_v52 }
  0xe1   :  { %v1673_v60 = vadd.f32 %v361_v59, %v360_v54 }
  0xe3   :  { %1298 = vtanh.f32 %v1673_v60 }
  0xe9   :  { %v1299_v63 = vpop.eup %1298 }
  0xea   :  { %v366_v0 = vmul.f32 %v1299_v63, %v364_v61 }
  0xec   :  { %v371_v1 = vpack.c.bf16 %v366_v0, %v366_v0 }
  0xee   :  { %380 = vmatmul.bf16.vlgmr.msrb.gmra.mxu0 %v371_v1  ;;  %393 = vmatmul.bf16.vlgmr.msrb.gmra.mxu1 %v371_v1 }
  0xef   :  { %406 = vmatmul.bf16.vlgmr.msrb.gmra.mxu2 %v371_v1  ;;  %419 = vmatmul.bf16.vlgmr.msrb.gmra.mxu3 %v371_v1 }
  0xf0   :  { %576 = vmatpush.bf16.msrb.mxu0 %v1501_v3  ;;  %589 = vmatpush.bf16.msrb.mxu1 %v1503_v7 }
  0xf1   :  { %602 = vmatpush.bf16.msrb.mxu2 %v1505_v8  ;;  %615 = vmatpush.bf16.msrb.mxu3 %v1508_v12 }
  0xf4   :  { %577 = vmatpush.bf16.msrb.mxu0 %v1512_v16  ;;  %590 = vmatpush.bf16.msrb.mxu1 %v1514_v17 }
  0xf5   :  { %603 = vmatpush.bf16.msrb.mxu2 %v1517_v21  ;;  %616 = vmatpush.bf16.msrb.mxu3 %v1519_v25 }
  0xf8   :  { %578 = vmatpush.bf16.msrb.mxu0 %v1522_v29  ;;  %591 = vmatpush.bf16.msrb.mxu1 %v1526_v33 }
  0xf9   :  { %604 = vmatpush.bf16.msrb.mxu2 %v1528_v34  ;;  %617 = vmatpush.bf16.msrb.mxu3 %v1531_v38 }
  0xfc   :  { %579 = vmatpush.bf16.msrb.mxu0 %v1534_v44  ;;  %592 = vmatpush.bf16.msrb.mxu1 %v1538_v45 }
  0xfd   :  { %605 = vmatpush.bf16.msrb.mxu2 %v1540_v46  ;;  %618 = vmatpush.bf16.msrb.mxu3 %v1543_v50 }
 0x100   :  { %580 = vmatpush.bf16.msrb.mxu0 %v1546_v56  ;;  %593 = vmatpush.bf16.msrb.mxu1 %v1550_v57 }
 0x101   :  { %606 = vmatpush.bf16.msrb.mxu2 %v1552_v58  ;;  %619 = vmatpush.bf16.msrb.mxu3 %v1555_v62 }
 0x104   :  { %581 = vmatpush.bf16.msrb.mxu0 %v1558_v5  ;;  %594 = vmatpush.bf16.msrb.mxu1 %v1562_v6 }
 0x105   :  { %607 = vmatpush.bf16.msrb.mxu2 %v1564_v9  ;;  %620 = vmatpush.bf16.msrb.mxu3 %v1567_v14 }
 0x108   :  { %582 = vmatpush.bf16.msrb.mxu0 %v1570_v23  ;;  %595 = vmatpush.bf16.msrb.mxu1 %v1574_v24 }
 0x109   :  { %608 = vmatpush.bf16.msrb.mxu2 %v1576_v26  ;;  %621 = vmatpush.bf16.msrb.mxu3 %v1579_v31 }
 0x10c   :  { %583 = vmatpush.bf16.msrb.mxu0 %v1582_v40  ;;  %596 = vmatpush.bf16.msrb.mxu1 %v1586_v41 }
 0x10d   :  { %609 = vmatpush.bf16.msrb.mxu2 %v1588_v42  ;;  %622 = vmatpush.bf16.msrb.mxu3 %v1591_v43 }
 0x16b   :  { %v381_v2 = vpop.f32.mrf.mxu0  ;;  %v394_v4 = vpop.f32.mrf.mxu1 }
 0x16c   :  { %v428_v13 = vrot.slane %v394_v4, 7 }
 0x16e   :  { %v431_v30 = vsel %vm326_vm0, %v381_v2, %v428_v13 }
 0x172   :  { %v407_v15 = vpop.f32.mrf.mxu2  ;;  %v420_v18 = vpop.f32.mrf.mxu3 }
 0x173   :  { %v429_v19 = vrot.slane %v407_v15, 6  ;;  %v430_v22 = vrot.slane %v420_v18, 5  ;;  %v383_v27 = vpop.f32.mrf.mxu0  ;;  %v396_v28 = vpop.f32.mrf.mxu1 }
 0x175   :  { %v432_v32 = vsel %vm328_vm1, %v429_v19, %v430_v22 }
 0x176   :  { %v433_v35 = vsel %vm330_vm2, %v431_v30, %v432_v32  ;;  %v470_v32 = vstv %s1241_s14 }
 0x177   :  { %v435_v36 = vadd.f32 %v433_v35, %v370_v20  ;;  %v471_v35 = vmul.f32 %v470_v32, %v1661_v51 }
 0x179   :  { %v1240_v37 = vmul.f32 -1.442695, %v435_v36  ;;  %v456_v54 = vrot.slane %v435_v36, 3 }
 0x17a   :  { %v409_v39 = vpop.f32.mrf.mxu2  ;;  %v422_v47 = vpop.f32.mrf.mxu3 }
 0x17b   :  { %1300 = vpow2.f32 %v1240_v37 }
 0x181   :  { %v1301_v48 = vpop.eup %1300 }
 0x182   :  { %v439_v49 = vadd.f32 1.0, %v1301_v48  ;;  %v472_v48 = vadd.f32 %v471_v35, %v1667_v55 }
 0x184   :  { %1302 = vrcp.f32 %v439_v49  ;;  %v451_v61 = vand.u32 2147483648, %v439_v49  ;;  %v449_v0 = vand.u32 2147483647, %v439_v49  ;;  %vm445_vm8 = vweird.f32 %v439_v49 }
 0x185   :  { %1304 = vtanh.f32 %v456_v54 }
 0x186   :  { %v452_v2 = vor.u32 1.1754944e-38, %v451_v61  ;;  %vm450_vm10 = vcmp.eq.f32.partialorder %v449_v0, 8.507059e+37 }
 0x18a   :  { %v1303_v52 = vpop.eup %1302 }
 0x18b   :  { %v441_v53 = vmul.f32 %v1303_v52, %v439_v49  ;;  %vm446_vm7 = vweird.f32 %v1303_v52  ;;  %v1305_v13 = vpop.eup %1304 }
 0x18c   :  { %vm447_vm9 = vmor %vm445_vm8, %vm446_vm7 }
 0x18d   :  { %v442_v59 = vsub.f32 1.0, %v441_v53 }
 0x18f   :  { %v443_v63 = vmul.f32 %v1303_v52, %v442_v59 }
 0x191   :  { %v444_v1 = vadd.f32 %v1303_v52, %v443_v63 }
 0x193   :  { %v448_v4 = vsel %vm447_vm9, %v1303_v52, %v444_v1 }
 0x194   :  { %v453_v10 = vsel %vm450_vm10, %v452_v2, %v448_v4 }
 0x195   :  { %v460_v11 = vrot.slane %v453_v10, 1  ;;  %v463_v18 = vmul.f32 %v1305_v13, %v453_v10  ;;  %v466_v20 = vrot.slane %v453_v10, 2 }
 0x197   :  { %v462_v15 = vmul.f32 %v460_v11, %v1673_v60 }
 0x199   :  { %v1714_v19 = vadd.f32 %v463_v18, %v462_v15 }
 0x19b   :  { %1306 = vtanh.f32 %v1714_v19 }
 0x1a1   :  { %v1307_v22 = vpop.eup %1306 }
 0x1a2   :  { %v468_v27 = vmul.f32 %v1307_v22, %v466_v20 }
 0x1a4   :  { %v473_v28 = vpack.c.bf16 %v468_v27, %v468_v27 }
 0x1a6   :  { %482 = vmatmul.bf16.vlgmr.msra.gmra.mxu0 %v473_v28  ;;  %495 = vmatmul.bf16.vlgmr.msra.gmra.mxu1 %v473_v28 }
 0x1a7   :  { %508 = vmatmul.bf16.vlgmr.msra.gmra.mxu2 %v473_v28  ;;  %521 = vmatmul.bf16.vlgmr.msra.gmra.mxu3 %v473_v28 }
 0x1a8   :  { %678 = vmatpush.bf16.msra.mxu0 %v1501_v3  ;;  %691 = vmatpush.bf16.msra.mxu1 %v1503_v7 }
 0x1a9   :  { %704 = vmatpush.bf16.msra.mxu2 %v1505_v8  ;;  %717 = vmatpush.bf16.msra.mxu3 %v1508_v12 }
 0x1ac   :  { %679 = vmatpush.bf16.msra.mxu0 %v1512_v16  ;;  %692 = vmatpush.bf16.msra.mxu1 %v1514_v17 }
 0x1ad   :  { %705 = vmatpush.bf16.msra.mxu2 %v1517_v21  ;;  %718 = vmatpush.bf16.msra.mxu3 %v1519_v25 }
 0x1b0   :  { %680 = vmatpush.bf16.msra.mxu0 %v1522_v29  ;;  %693 = vmatpush.bf16.msra.mxu1 %v1526_v33 }
 0x1b1   :  { %706 = vmatpush.bf16.msra.mxu2 %v1528_v34  ;;  %719 = vmatpush.bf16.msra.mxu3 %v1531_v38 }
 0x1b4   :  { %681 = vmatpush.bf16.msra.mxu0 %v1534_v44  ;;  %694 = vmatpush.bf16.msra.mxu1 %v1538_v45 }
 0x1b5   :  { %707 = vmatpush.bf16.msra.mxu2 %v1540_v46  ;;  %720 = vmatpush.bf16.msra.mxu3 %v1543_v50 }
 0x1b8   :  { %682 = vmatpush.bf16.msra.mxu0 %v1546_v56  ;;  %695 = vmatpush.bf16.msra.mxu1 %v1550_v57 }
 0x1b9   :  { %708 = vmatpush.bf16.msra.mxu2 %v1552_v58  ;;  %721 = vmatpush.bf16.msra.mxu3 %v1555_v62 }
 0x1bc   :  { %683 = vmatpush.bf16.msra.mxu0 %v1558_v5  ;;  %696 = vmatpush.bf16.msra.mxu1 %v1562_v6 }
 0x1bd   :  { %709 = vmatpush.bf16.msra.mxu2 %v1564_v9  ;;  %722 = vmatpush.bf16.msra.mxu3 %v1567_v14 }
 0x1c0   :  { %684 = vmatpush.bf16.msra.mxu0 %v1570_v23  ;;  %697 = vmatpush.bf16.msra.mxu1 %v1574_v24 }
 0x1c1   :  { %710 = vmatpush.bf16.msra.mxu2 %v1576_v26  ;;  %723 = vmatpush.bf16.msra.mxu3 %v1579_v31 }
 0x1c4   :  { %685 = vmatpush.bf16.msra.mxu0 %v1582_v40  ;;  %698 = vmatpush.bf16.msra.mxu1 %v1586_v41 }
 0x1c5   :  { %711 = vmatpush.bf16.msra.mxu2 %v1588_v42  ;;  %724 = vmatpush.bf16.msra.mxu3 %v1591_v43 }
 0x223   :  { %v483_v60 = vpop.f32.mrf.mxu0  ;;  %v496_v30 = vpop.f32.mrf.mxu1 }
 0x224   :  { %v530_v36 = vrot.slane %v496_v30, 7 }
 0x226   :  { %v533_v54 = vsel %vm326_vm0, %v483_v60, %v530_v36 }
 0x22a   :  { %v509_v37 = vpop.f32.mrf.mxu2  ;;  %v522_v39 = vpop.f32.mrf.mxu3 }
 0x22b   :  { %v531_v47 = vrot.slane %v509_v37, 6  ;;  %v532_v49 = vrot.slane %v522_v39, 5  ;;  %v485_v52 = vpop.f32.mrf.mxu0  ;;  %v498_v53 = vpop.f32.mrf.mxu1 }
 0x22d   :  { %v534_v59 = vsel %vm328_vm1, %v531_v47, %v532_v49 }
 0x22e   :  { %v535_v61 = vsel %vm330_vm2, %v533_v54, %v534_v59  ;;  %v572_v59 = vstv %s1243_s15 }
 0x22f   :  { %v537_v63 = vadd.f32 %v535_v61, %v472_v48  ;;  %v573_v61 = vmul.f32 %v572_v59, %v1661_v51 }
 0x231   :  { %v1242_v0 = vmul.f32 -1.442695, %v537_v63  ;;  %v558_v15 = vrot.slane %v537_v63, 3 }
 0x232   :  { %v511_v1 = vpop.f32.mrf.mxu2  ;;  %v524_v2 = vpop.f32.mrf.mxu3 }
 0x233   :  { %1308 = vpow2.f32 %v1242_v0 }
 0x239   :  { %v1309_v4 = vpop.eup %1308 }
 0x23a   :  { %v541_v10 = vadd.f32 1.0, %v1309_v4  ;;  %v574_v4 = vadd.f32 %v573_v61, %v1667_v55 }
 0x23c   :  { %1310 = vrcp.f32 %v541_v10  ;;  %v553_v20 = vand.u32 2147483648, %v541_v10  ;;  %v551_v27 = vand.u32 2147483647, %v541_v10  ;;  %vm547_vm12 = vweird.f32 %v541_v10 }
 0x23d   :  { %1312 = vtanh.f32 %v558_v15 }
 0x23e   :  { %v554_v60 = vor.u32 1.1754944e-38, %v553_v20  ;;  %vm552_vm14 = vcmp.eq.f32.partialorder %v551_v27, 8.507059e+37 }
 0x242   :  { %v1311_v11 = vpop.eup %1310 }
 0x243   :  { %v543_v13 = vmul.f32 %v1311_v11, %v541_v10  ;;  %vm548_vm11 = vweird.f32 %v1311_v11  ;;  %v1313_v36 = vpop.eup %1312 }
 0x244   :  { %vm549_vm13 = vmor %vm547_vm12, %vm548_vm11 }
 0x245   :  { %v544_v18 = vsub.f32 1.0, %v543_v13 }
 0x247   :  { %v545_v22 = vmul.f32 %v1311_v11, %v544_v18 }
 0x249   :  { %v546_v28 = vadd.f32 %v1311_v11, %v545_v22 }
 0x24b   :  { %v550_v30 = vsel %vm549_vm13, %v1311_v11, %v546_v28 }
 0x24c   :  { %v555_v32 = vsel %vm552_vm14, %v554_v60, %v550_v30 }
 0x24d   :  { %v562_v35 = vrot.slane %v555_v32, 1  ;;  %v565_v39 = vmul.f32 %v1313_v36, %v555_v32  ;;  %v568_v48 = vrot.slane %v555_v32, 2 }
 0x24f   :  { %v564_v37 = vmul.f32 %v562_v35, %v1714_v19 }
 0x251   :  { %v1755_v47 = vadd.f32 %v565_v39, %v564_v37 }
 0x253   :  { %1314 = vtanh.f32 %v1755_v47 }
 0x259   :  { %v1315_v49 = vpop.eup %1314 }
 0x25a   :  { %v570_v52 = vmul.f32 %v1315_v49, %v568_v48 }
 0x25c   :  { %v575_v53 = vpack.c.bf16 %v570_v52, %v570_v52 }
 0x25e   :  { %584 = vmatmul.bf16.vlgmr.msrb.gmra.mxu0 %v575_v53  ;;  %597 = vmatmul.bf16.vlgmr.msrb.gmra.mxu1 %v575_v53 }
 0x25f   :  { %610 = vmatmul.bf16.vlgmr.msrb.gmra.mxu2 %v575_v53  ;;  %623 = vmatmul.bf16.vlgmr.msrb.gmra.mxu3 %v575_v53 }
 0x260   :  { %780 = vmatpush.bf16.msrb.mxu0 %v1501_v3  ;;  %793 = vmatpush.bf16.msrb.mxu1 %v1503_v7 }
 0x261   :  { %806 = vmatpush.bf16.msrb.mxu2 %v1505_v8  ;;  %819 = vmatpush.bf16.msrb.mxu3 %v1508_v12 }
 0x264   :  { %781 = vmatpush.bf16.msrb.mxu0 %v1512_v16  ;;  %794 = vmatpush.bf16.msrb.mxu1 %v1514_v17 }
 0x265   :  { %807 = vmatpush.bf16.msrb.mxu2 %v1517_v21  ;;  %820 = vmatpush.bf16.msrb.mxu3 %v1519_v25 }
 0x268   :  { %782 = vmatpush.bf16.msrb.mxu0 %v1522_v29  ;;  %795 = vmatpush.bf16.msrb.mxu1 %v1526_v33 }
 0x269   :  { %808 = vmatpush.bf16.msrb.mxu2 %v1528_v34  ;;  %821 = vmatpush.bf16.msrb.mxu3 %v1531_v38 }
 0x26c   :  { %783 = vmatpush.bf16.msrb.mxu0 %v1534_v44  ;;  %796 = vmatpush.bf16.msrb.mxu1 %v1538_v45 }
 0x26d   :  { %809 = vmatpush.bf16.msrb.mxu2 %v1540_v46  ;;  %822 = vmatpush.bf16.msrb.mxu3 %v1543_v50 }
 0x270   :  { %784 = vmatpush.bf16.msrb.mxu0 %v1546_v56  ;;  %797 = vmatpush.bf16.msrb.mxu1 %v1550_v57 }
 0x271   :  { %810 = vmatpush.bf16.msrb.mxu2 %v1552_v58  ;;  %823 = vmatpush.bf16.msrb.mxu3 %v1555_v62 }
 0x274   :  { %785 = vmatpush.bf16.msrb.mxu0 %v1558_v5  ;;  %798 = vmatpush.bf16.msrb.mxu1 %v1562_v6 }
 0x275   :  { %811 = vmatpush.bf16.msrb.mxu2 %v1564_v9  ;;  %824 = vmatpush.bf16.msrb.mxu3 %v1567_v14 }
 0x278   :  { %786 = vmatpush.bf16.msrb.mxu0 %v1570_v23  ;;  %799 = vmatpush.bf16.msrb.mxu1 %v1574_v24 }
 0x279   :  { %812 = vmatpush.bf16.msrb.mxu2 %v1576_v26  ;;  %825 = vmatpush.bf16.msrb.mxu3 %v1579_v31 }
 0x27c   :  { %787 = vmatpush.bf16.msrb.mxu0 %v1582_v40  ;;  %800 = vmatpush.bf16.msrb.mxu1 %v1586_v41 }
 0x27d   :  { %813 = vmatpush.bf16.msrb.mxu2 %v1588_v42  ;;  %826 = vmatpush.bf16.msrb.mxu3 %v1591_v43 }
 0x2db   :  { %v585_v19 = vpop.f32.mrf.mxu0  ;;  %v598_v54 = vpop.f32.mrf.mxu1 }
 0x2dc   :  { %v632_v63 = vrot.slane %v598_v54, 7 }
 0x2de   :  { %v635_v15 = vsel %vm326_vm0, %v585_v19, %v632_v63 }
 0x2e2   :  { %v611_v0 = vpop.f32.mrf.mxu2  ;;  %v624_v1 = vpop.f32.mrf.mxu3 }
 0x2e3   :  { %v633_v2 = vrot.slane %v611_v0, 6  ;;  %v634_v10 = vrot.slane %v624_v1, 5  ;;  %v587_v11 = vpop.f32.mrf.mxu0  ;;  %v600_v13 = vpop.f32.mrf.mxu1 }
 0x2e5   :  { %v636_v18 = vsel %vm328_vm1, %v633_v2, %v634_v10 }
 0x2e6   :  { %v637_v20 = vsel %vm330_vm2, %v635_v15, %v636_v18  ;;  %v674_v18 = vstv %s1245_s16 }
 0x2e7   :  { %v639_v22 = vadd.f32 %v637_v20, %v574_v4  ;;  %v675_v20 = vmul.f32 %v674_v18, %v1661_v51 }
 0x2e9   :  { %v1244_v27 = vmul.f32 -1.442695, %v639_v22  ;;  %v660_v37 = vrot.slane %v639_v22, 3 }
 0x2ea   :  { %v613_v28 = vpop.f32.mrf.mxu2  ;;  %v626_v60 = vpop.f32.mrf.mxu3 }
 0x2eb   :  { %1316 = vpow2.f32 %v1244_v27 }
 0x2f1   :  { %v1317_v30 = vpop.eup %1316 }
 0x2f2   :  { %v643_v32 = vadd.f32 1.0, %v1317_v30  ;;  %v676_v30 = vadd.f32 %v675_v20, %v1667_v55 }
 0x2f4   :  { %1318 = vrcp.f32 %v643_v32  ;;  %v655_v48 = vand.u32 2147483648, %v643_v32  ;;  %v653_v52 = vand.u32 2147483647, %v643_v32  ;;  %vm649_vm3 = vweird.f32 %v643_v32 }
 0x2f5   :  { %1320 = vtanh.f32 %v660_v37 }
 0x2f6   :  { %v656_v19 = vor.u32 1.1754944e-38, %v655_v48  ;;  %vm654_vm5 = vcmp.eq.f32.partialorder %v653_v52, 8.507059e+37 }
 0x2fa   :  { %v1319_v35 = vpop.eup %1318 }
 0x2fb   :  { %v645_v36 = vmul.f32 %v1319_v35, %v643_v32  ;;  %vm650_vm15 = vweird.f32 %v1319_v35  ;;  %v1321_v63 = vpop.eup %1320 }
 0x2fc   :  { %vm651_vm4 = vmor %vm649_vm3, %vm650_vm15 }
 0x2fd   :  { %v646_v39 = vsub.f32 1.0, %v645_v36 }
 0x2ff   :  { %v647_v49 = vmul.f32 %v1319_v35, %v646_v39 }
 0x301   :  { %v648_v53 = vadd.f32 %v1319_v35, %v647_v49 }
 0x303   :  { %v652_v54 = vsel %vm651_vm4, %v1319_v35, %v648_v53 }
 0x304   :  { %v657_v59 = vsel %vm654_vm5, %v656_v19, %v652_v54 }
 0x305   :  { %v664_v61 = vrot.slane %v657_v59, 1  ;;  %v667_v1 = vmul.f32 %v1321_v63, %v657_v59  ;;  %v670_v4 = vrot.slane %v657_v59, 2 }
 0x307   :  { %v666_v0 = vmul.f32 %v664_v61, %v1755_v47 }
 0x309   :  { %v1796_v2 = vadd.f32 %v667_v1, %v666_v0 }
 0x30b   :  { %1322 = vtanh.f32 %v1796_v2 }
 0x311   :  { %v1323_v10 = vpop.eup %1322 }
 0x312   :  { %v672_v11 = vmul.f32 %v1323_v10, %v670_v4 }
 0x314   :  { %v677_v13 = vpack.c.bf16 %v672_v11, %v672_v11 }
 0x316   :  { %686 = vmatmul.bf16.vlgmr.msra.gmra.mxu0 %v677_v13  ;;  %699 = vmatmul.bf16.vlgmr.msra.gmra.mxu1 %v677_v13 }
 0x317   :  { %712 = vmatmul.bf16.vlgmr.msra.gmra.mxu2 %v677_v13  ;;  %725 = vmatmul.bf16.vlgmr.msra.gmra.mxu3 %v677_v13 }
 0x318   :  { %882 = vmatpush.bf16.msra.mxu0 %v1501_v3  ;;  %895 = vmatpush.bf16.msra.mxu1 %v1503_v7 }
 0x319   :  { %908 = vmatpush.bf16.msra.mxu2 %v1505_v8  ;;  %921 = vmatpush.bf16.msra.mxu3 %v1508_v12 }
 0x31c   :  { %883 = vmatpush.bf16.msra.mxu0 %v1512_v16  ;;  %896 = vmatpush.bf16.msra.mxu1 %v1514_v17 }
 0x31d   :  { %909 = vmatpush.bf16.msra.mxu2 %v1517_v21  ;;  %922 = vmatpush.bf16.msra.mxu3 %v1519_v25 }
 0x320   :  { %884 = vmatpush.bf16.msra.mxu0 %v1522_v29  ;;  %897 = vmatpush.bf16.msra.mxu1 %v1526_v33 }
 0x321   :  { %910 = vmatpush.bf16.msra.mxu2 %v1528_v34  ;;  %923 = vmatpush.bf16.msra.mxu3 %v1531_v38 }
 0x324   :  { %885 = vmatpush.bf16.msra.mxu0 %v1534_v44  ;;  %898 = vmatpush.bf16.msra.mxu1 %v1538_v45 }
 0x325   :  { %911 = vmatpush.bf16.msra.mxu2 %v1540_v46  ;;  %924 = vmatpush.bf16.msra.mxu3 %v1543_v50 }
 0x328   :  { %886 = vmatpush.bf16.msra.mxu0 %v1546_v56  ;;  %899 = vmatpush.bf16.msra.mxu1 %v1550_v57 }
 0x329   :  { %912 = vmatpush.bf16.msra.mxu2 %v1552_v58  ;;  %925 = vmatpush.bf16.msra.mxu3 %v1555_v62 }
 0x32c   :  { %887 = vmatpush.bf16.msra.mxu0 %v1558_v5  ;;  %900 = vmatpush.bf16.msra.mxu1 %v1562_v6 }
 0x32d   :  { %913 = vmatpush.bf16.msra.mxu2 %v1564_v9  ;;  %926 = vmatpush.bf16.msra.mxu3 %v1567_v14 }
 0x330   :  { %888 = vmatpush.bf16.msra.mxu0 %v1570_v23  ;;  %901 = vmatpush.bf16.msra.mxu1 %v1574_v24 }
 0x331   :  { %914 = vmatpush.bf16.msra.mxu2 %v1576_v26  ;;  %927 = vmatpush.bf16.msra.mxu3 %v1579_v31 }
 0x334   :  { %889 = vmatpush.bf16.msra.mxu0 %v1582_v40  ;;  %902 = vmatpush.bf16.msra.mxu1 %v1586_v41 }
 0x335   :  { %915 = vmatpush.bf16.msra.mxu2 %v1588_v42  ;;  %928 = vmatpush.bf16.msra.mxu3 %v1591_v43 }
 0x393   :  { %v687_v47 = vpop.f32.mrf.mxu0  ;;  %v700_v15 = vpop.f32.mrf.mxu1 }
 0x394   :  { %v734_v22 = vrot.slane %v700_v15, 7 }
 0x396   :  { %v737_v37 = vsel %vm326_vm0, %v687_v47, %v734_v22 }
 0x39a   :  { %v713_v27 = vpop.f32.mrf.mxu2  ;;  %v726_v28 = vpop.f32.mrf.mxu3 }
 0x39b   :  { %v735_v60 = vrot.slane %v713_v27, 6  ;;  %v736_v32 = vrot.slane %v726_v28, 5  ;;  %v689_v35 = vpop.f32.mrf.mxu0  ;;  %v702_v36 = vpop.f32.mrf.mxu1 }
 0x39d   :  { %v738_v39 = vsel %vm328_vm1, %v735_v60, %v736_v32 }
 0x39e   :  { %v739_v48 = vsel %vm330_vm2, %v737_v37, %v738_v39 }
 0x39f   :  { %v741_v49 = vadd.f32 %v739_v48, %v676_v30 }
 0x3a1   :  { %v1246_v52 = vmul.f32 -1.442695, %v741_v49  ;;  %v762_v0 = vrot.slane %v741_v49, 3 }
 0x3a2   :  { %v715_v53 = vpop.f32.mrf.mxu2  ;;  %v728_v19 = vpop.f32.mrf.mxu3 }
 0x3a3   :  { %1324 = vpow2.f32 %v1246_v52 }
 0x3a9   :  { %v1325_v54 = vpop.eup %1324 }
 0x3aa   :  { %v745_v59 = vadd.f32 1.0, %v1325_v54 }
 0x3ac   :  { %1326 = vrcp.f32 %v745_v59  ;;  %v757_v4 = vand.u32 2147483648, %v745_v59  ;;  %v755_v11 = vand.u32 2147483647, %v745_v59  ;;  %vm751_vm7 = vweird.f32 %v745_v59 }
 0x3ad   :  { %1328 = vtanh.f32 %v762_v0 }
 0x3ae   :  { %v758_v47 = vor.u32 1.1754944e-38, %v757_v4  ;;  %vm756_vm9 = vcmp.eq.f32.partialorder %v755_v11, 8.507059e+37 }
 0x3b2   :  { %v1327_v61 = vpop.eup %1326 }
 0x3b3   :  { %v747_v63 = vmul.f32 %v1327_v61, %v745_v59  ;;  %vm752_vm6 = vweird.f32 %v1327_v61  ;;  %v1329_v22 = vpop.eup %1328 }
 0x3b4   :  { %vm753_vm8 = vmor %vm751_vm7, %vm752_vm6  ;;  %vm1089_vm7 = vcmask 0  }
 0x3b5   :  { %v748_v1 = vsub.f32 1.0, %v747_v63  ;;  %v878_v63 = vstv %s1249_s18 }
 0x3b6   :  { %v879_v0 = vmul.f32 %v878_v63, %v1661_v51 }
 0x3b7   :  { %v749_v10 = vmul.f32 %v1327_v61, %v748_v1 }
 0x3b9   :  { %v750_v13 = vadd.f32 %v1327_v61, %v749_v10 }
 0x3bb   :  { %v754_v15 = vsel %vm753_vm8, %v1327_v61, %v750_v13  ;;  %v880_v13 = vadd.f32 %v879_v0, %v1667_v55 }
 0x3bc   :  { %v759_v18 = vsel %vm756_vm9, %v758_v47, %v754_v15 }
 0x3bd   :  { %v766_v20 = vrot.slane %v759_v18, 1  ;;  %v769_v28 = vmul.f32 %v1329_v22, %v759_v18  ;;  %v772_v30 = vrot.slane %v759_v18, 2 }
 0x3bf   :  { %v768_v27 = vmul.f32 %v766_v20, %v1796_v2 }
 0x3c1   :  { %v1837_v60 = vadd.f32 %v769_v28, %v768_v27 }
 0x3c3   :  { %1330 = vtanh.f32 %v1837_v60 }
 0x3c9   :  { %v1331_v32 = vpop.eup %1330 }
 0x3ca   :  { %v774_v35 = vmul.f32 %v1331_v32, %v772_v30 }
 0x3cc   :  { %v779_v36 = vpack.c.bf16 %v774_v35, %v774_v35 }
 0x3ce   :  { %788 = vmatmul.bf16.vlgmr.msrb.gmra.mxu0 %v779_v36  ;;  %801 = vmatmul.bf16.vlgmr.msrb.gmra.mxu1 %v779_v36 }
 0x3cf   :  { %814 = vmatmul.bf16.vlgmr.msrb.gmra.mxu2 %v779_v36  ;;  %827 = vmatmul.bf16.vlgmr.msrb.gmra.mxu3 %v779_v36 }
 0x3d0   :  { %984 = vmatpush.bf16.msrb.mxu0 %v1501_v3  ;;  %997 = vmatpush.bf16.msrb.mxu1 %v1503_v7 }
 0x3d1   :  { %1010 = vmatpush.bf16.msrb.mxu2 %v1505_v8  ;;  %1023 = vmatpush.bf16.msrb.mxu3 %v1508_v12  ;;  %v776_v8 = vstv %s1247_s17 }
 0x3d2   :  { %v777_v12 = vmul.f32 %v776_v8, %v1661_v51 }
 0x3d4   :  { %985 = vmatpush.bf16.msrb.mxu0 %v1512_v16  ;;  %998 = vmatpush.bf16.msrb.mxu1 %v1514_v17 }
 0x3d5   :  { %1011 = vmatpush.bf16.msrb.mxu2 %v1517_v21  ;;  %1024 = vmatpush.bf16.msrb.mxu3 %v1519_v25 }
 0x3d8   :  { %986 = vmatpush.bf16.msrb.mxu0 %v1522_v29  ;;  %999 = vmatpush.bf16.msrb.mxu1 %v1526_v33  ;;  %v778_v29 = vadd.f32 %v777_v12, %v1667_v55 }
 0x3d9   :  { %1012 = vmatpush.bf16.msrb.mxu2 %v1528_v34  ;;  %1025 = vmatpush.bf16.msrb.mxu3 %v1531_v38 }
 0x3dc   :  { %987 = vmatpush.bf16.msrb.mxu0 %v1534_v44  ;;  %1000 = vmatpush.bf16.msrb.mxu1 %v1538_v45 }
 0x3dd   :  { %1013 = vmatpush.bf16.msrb.mxu2 %v1540_v46  ;;  %1026 = vmatpush.bf16.msrb.mxu3 %v1543_v50 }
 0x3e0   :  { %988 = vmatpush.bf16.msrb.mxu0 %v1546_v56  ;;  %1001 = vmatpush.bf16.msrb.mxu1 %v1550_v57 }
 0x3e1   :  { %1014 = vmatpush.bf16.msrb.mxu2 %v1552_v58  ;;  %1027 = vmatpush.bf16.msrb.mxu3 %v1555_v62 }
 0x3e4   :  { %989 = vmatpush.bf16.msrb.mxu0 %v1558_v5  ;;  %1002 = vmatpush.bf16.msrb.mxu1 %v1562_v6 }
 0x3e5   :  { %1015 = vmatpush.bf16.msrb.mxu2 %v1564_v9  ;;  %1028 = vmatpush.bf16.msrb.mxu3 %v1567_v14 }
 0x3e8   :  { %990 = vmatpush.bf16.msrb.mxu0 %v1570_v23  ;;  %1003 = vmatpush.bf16.msrb.mxu1 %v1574_v24 }
 0x3e9   :  { %1016 = vmatpush.bf16.msrb.mxu2 %v1576_v26  ;;  %1029 = vmatpush.bf16.msrb.mxu3 %v1579_v31 }
 0x3ec   :  { %991 = vmatpush.bf16.msrb.mxu0 %v1582_v40  ;;  %1004 = vmatpush.bf16.msrb.mxu1 %v1586_v41 }
 0x3ed   :  { %1017 = vmatpush.bf16.msrb.mxu2 %v1588_v42  ;;  %1030 = vmatpush.bf16.msrb.mxu3 %v1591_v43 }
 0x44b   :  { %v789_v3 = vpop.f32.mrf.mxu0  ;;  %v802_v7 = vpop.f32.mrf.mxu1 }
 0x44c   :  { %v836_v16 = vrot.slane %v802_v7, 7 }
 0x44e   :  { %v839_v44 = vsel %vm326_vm0, %v789_v3, %v836_v16 }
 0x452   :  { %v815_v17 = vpop.f32.mrf.mxu2  ;;  %v828_v21 = vpop.f32.mrf.mxu3 }
 0x453   :  { %v837_v25 = vrot.slane %v815_v17, 6  ;;  %v838_v33 = vrot.slane %v828_v21, 5  ;;  %v791_v34 = vpop.f32.mrf.mxu0  ;;  %v804_v38 = vpop.f32.mrf.mxu1 }
 0x455   :  { %v840_v45 = vsel %vm328_vm1, %v837_v25, %v838_v33 }
 0x456   :  { %v841_v46 = vsel %vm330_vm2, %v839_v44, %v840_v45 }
 0x457   :  { %v843_v50 = vadd.f32 %v841_v46, %v778_v29 }
 0x459   :  { %v1248_v56 = vmul.f32 -1.442695, %v843_v50  ;;  %v864_v14 = vrot.slane %v843_v50, 3 }
 0x45a   :  { %v817_v57 = vpop.f32.mrf.mxu2  ;;  %v830_v58 = vpop.f32.mrf.mxu3 }
 0x45b   :  { %1332 = vpow2.f32 %v1248_v56 }
 0x461   :  { %v1333_v62 = vpop.eup %1332 }
 0x462   :  { %v847_v5 = vadd.f32 1.0, %v1333_v62 }
 0x464   :  { %1334 = vrcp.f32 %v847_v5  ;;  %v859_v24 = vand.u32 2147483648, %v847_v5  ;;  %v857_v31 = vand.u32 2147483647, %v847_v5  ;;  %vm853_vm11 = vweird.f32 %v847_v5 }
 0x465   :  { %1336 = vtanh.f32 %v864_v14 }
 0x466   :  { %v860_v41 = vor.u32 1.1754944e-38, %v859_v24  ;;  %vm858_vm13 = vcmp.eq.f32.partialorder %v857_v31, 8.507059e+37  ;;  %v1357_v31 = vld [vmem:[%s1902_s3] sm:$0xf] }
 0x46a   :  { %v1335_v6 = vpop.eup %1334 }
 0x46b   :  { %v849_v9 = vmul.f32 %v1335_v6, %v847_v5  ;;  %vm854_vm10 = vweird.f32 %v1335_v6  ;;  %v1337_v37 = vpop.eup %1336  ;;  %v980_v5 = vstv %s1251_s19 }
 0x46c   :  { %vm855_vm12 = vmor %vm853_vm11, %vm854_vm10 }
 0x46d   :  { %v850_v23 = vsub.f32 1.0, %v849_v9 }
 0x46f   :  { %v851_v26 = vmul.f32 %v1335_v6, %v850_v23 }
 0x471   :  { %v852_v40 = vadd.f32 %v1335_v6, %v851_v26 }
 0x473   :  { %v856_v42 = vsel %vm855_vm12, %v1335_v6, %v852_v40  ;;  %v1356_v6 = vld [vmem:[#allocation7] sm:$0xf] }
 0x474   :  { %v861_v43 = vsel %vm858_vm13, %v860_v41, %v856_v42  ;;  %v981_v9 = vmul.f32 %v1356_v6, %v980_v5 }
 0x475   :  { %v868_v2 = vrot.slane %v861_v43, 1  ;;  %v871_v48 = vmul.f32 %v1337_v37, %v861_v43  ;;  %v874_v52 = vrot.slane %v861_v43, 2 }
 0x476   :  { %v982_v40 = vadd.f32 %v1357_v31, %v981_v9 }
 0x477   :  { %v870_v39 = vmul.f32 %v868_v2, %v1837_v60 }
 0x479   :  { %v872_v49 = vadd.f32 %v871_v48, %v870_v39 }
 0x47b   :  { %1338 = vtanh.f32 %v872_v49 }
 0x481   :  { %v1339_v53 = vpop.eup %1338 }
 0x482   :  { %v876_v19 = vmul.f32 %v1339_v53, %v874_v52 }
 0x484   :  { %v881_v54 = vpack.c.bf16 %v876_v19, %v876_v19 }
 0x486   :  { %890 = vmatmul.bf16.vlgmr.msra.gmra.mxu0 %v881_v54  ;;  %903 = vmatmul.bf16.vlgmr.msra.gmra.mxu1 %v881_v54 }
 0x487   :  { %916 = vmatmul.bf16.vlgmr.msra.gmra.mxu2 %v881_v54  ;;  %929 = vmatmul.bf16.vlgmr.msra.gmra.mxu3 %v881_v54 }
 0x503   :  { %v891_v59 = vpop.f32.mrf.mxu0  ;;  %v904_v61 = vpop.f32.mrf.mxu1 }
 0x504   :  { %v938_v1 = vrot.slane %v904_v61, 7 }
 0x506   :  { %v941_v20 = vsel %vm326_vm0, %v891_v59, %v938_v1 }
 0x50a   :  { %v917_v4 = vpop.f32.mrf.mxu2  ;;  %v930_v10 = vpop.f32.mrf.mxu3 }
 0x50b   :  { %v939_v11 = vrot.slane %v917_v4, 6  ;;  %v940_v47 = vrot.slane %v930_v10, 5  ;;  %v893_v15 = vpop.f32.mrf.mxu0  ;;  %v906_v18 = vpop.f32.mrf.mxu1 }
 0x50d   :  { %v942_v22 = vsel %vm328_vm1, %v939_v11, %v940_v47 }
 0x50e   :  { %v943_v27 = vsel %vm330_vm2, %v941_v20, %v942_v22 }
 0x50f   :  { %v945_v28 = vadd.f32 %v943_v27, %v880_v13 }
 0x511   :  { %v1250_v60 = vmul.f32 -1.442695, %v945_v28  ;;  %v966_v55 = vrot.slane %v945_v28, 3 }
 0x512   :  { %v919_v30 = vpop.f32.mrf.mxu2  ;;  %v932_v32 = vpop.f32.mrf.mxu3 }
 0x513   :  { %1340 = vpow2.f32 %v1250_v60  ;;  %v1081_v32 = vld [vmem:[%s1903_s4] sm:$0x1] }
 0x519   :  { %v1341_v51 = vpop.eup %1340 }
 0x51a   :  { %v949_v35 = vadd.f32 1.0, %v1341_v51 }
 0x51c   :  { %1342 = vrcp.f32 %v949_v35  ;;  %v961_v8 = vand.u32 2147483648, %v949_v35  ;;  %v959_v16 = vand.u32 2147483647, %v949_v35  ;;  %vm955_vm15 = vweird.f32 %v949_v35 }
 0x51d   :  { %1344 = vtanh.f32 %v966_v55 }
 0x51e   :  { %v962_v21 = vor.u32 1.1754944e-38, %v961_v8  ;;  %vm960_vm4 = vcmp.eq.f32.partialorder %v959_v16, 8.507059e+37 }
 0x522   :  { %v1343_v36 = vpop.eup %1342 }
 0x523   :  { %v951_v3 = vmul.f32 %v1343_v36, %v949_v35  ;;  %vm956_vm14 = vweird.f32 %v1343_v36  ;;  %v1345_v34 = vpop.eup %1344 }
 0x524   :  { %vm957_vm3 = vmor %vm955_vm15, %vm956_vm14 }
 0x525   :  { %v952_v7 = vsub.f32 1.0, %v951_v3  ;;  %v1087_v3 = vstv %s1904_s5 }
 0x527   :  { %v953_v12 = vmul.f32 %v1343_v36, %v952_v7 }
 0x529   :  { %v954_v17 = vadd.f32 %v1343_v36, %v953_v12 }
 0x52b   :  { %v958_v25 = vsel %vm957_vm3, %v1343_v36, %v954_v17 }
 0x52c   :  { %v963_v29 = vsel %vm960_vm4, %v962_v21, %v958_v25 }
 0x52d   :  { %v970_v33 = vrot.slane %v963_v29, 1  ;;  %v973_v44 = vmul.f32 %v1345_v34, %v963_v29  ;;  %v976_v46 = vrot.slane %v963_v29, 2 }
 0x52f   :  { %v972_v38 = vmul.f32 %v970_v33, %v872_v49 }
 0x531   :  { %v974_v45 = vadd.f32 %v973_v44, %v972_v38 }
 0x533   :  { %1346 = vtanh.f32 %v974_v45 }
 0x539   :  { %v1347_v50 = vpop.eup %1346 }
 0x53a   :  { %v978_v56 = vmul.f32 %v1347_v50, %v976_v46 }
 0x53c   :  { %v983_v57 = vpack.c.bf16 %v978_v56, %v978_v56 }
 0x53e   :  { %992 = vmatmul.bf16.vlgmr.msrb.gmra.mxu0 %v983_v57  ;;  %1005 = vmatmul.bf16.vlgmr.msrb.gmra.mxu1 %v983_v57 }
 0x53f   :  { %1018 = vmatmul.bf16.vlgmr.msrb.gmra.mxu2 %v983_v57  ;;  %1031 = vmatmul.bf16.vlgmr.msrb.gmra.mxu3 %v983_v57 }
 0x5bb   :  { %v993_v58 = vpop.f32.mrf.mxu0  ;;  %v1006_v62 = vpop.f32.mrf.mxu1 }
 0x5bc   :  { %v1040_v14 = vrot.slane %v1006_v62, 7 }
 0x5be   :  { %v1043_v2 = vsel %vm326_vm0, %v993_v58, %v1040_v14 }
 0x5c2   :  { %v1019_v23 = vpop.f32.mrf.mxu2  ;;  %v1032_v24 = vpop.f32.mrf.mxu3 }
 0x5c3   :  { %v1041_v26 = vrot.slane %v1019_v23, 6  ;;  %v1042_v41 = vrot.slane %v1032_v24, 5  ;;  %v995_v42 = vpop.f32.mrf.mxu0  ;;  %v1008_v43 = vpop.f32.mrf.mxu1 }
 0x5c5   :  { %v1044_v37 = vsel %vm328_vm1, %v1041_v26, %v1042_v41 }
 0x5c6   :  { %v1045_v39 = vsel %vm330_vm2, %v1043_v2, %v1044_v37 }
 0x5c7   :  { %v1047_v48 = vadd.f32 %v1045_v39, %v982_v40 }
 0x5c9   :  { %v1252_v49 = vmul.f32 -1.442695, %v1047_v48  ;;  %v1068_v63 = vrot.slane %v1047_v48, 3 }
 0x5ca   :  { %v1021_v52 = vpop.f32.mrf.mxu2  ;;  %v1034_v53 = vpop.f32.mrf.mxu3 }
 0x5cb   :  { %1348 = vpow2.f32 %v1252_v49 }
 0x5d1   :  { %v1349_v19 = vpop.eup %1348 }
 0x5d2   :  { %v1051_v54 = vadd.f32 1.0, %v1349_v19 }
 0x5d4   :  { %1350 = vrcp.f32 %v1051_v54  ;;  %v1063_v1 = vand.u32 2147483648, %v1051_v54  ;;  %v1061_v10 = vand.u32 2147483647, %v1051_v54  ;;  %vm1057_vm1 = vweird.f32 %v1051_v54 }
 0x5d5   :  { %1352 = vtanh.f32 %v1068_v63 }
 0x5d6   :  { %v1064_v13 = vor.u32 1.1754944e-38, %v1063_v1  ;;  %vm1062_vm6 = vcmp.eq.f32.partialorder %v1061_v10, 8.507059e+37 }
 0x5da   :  { %v1351_v59 = vpop.eup %1350 }
 0x5db   :  { %v1053_v61 = vmul.f32 %v1351_v59, %v1051_v54  ;;  %vm1058_vm5 = vweird.f32 %v1351_v59  ;;  %v1353_v20 = vpop.eup %1352 }
 0x5dc   :  { %vm1059_vm2 = vmor %vm1057_vm1, %vm1058_vm5 }
 0x5dd   :  { %v1054_v0 = vsub.f32 1.0, %v1053_v61 }
 0x5df   :  { %v1055_v4 = vmul.f32 %v1351_v59, %v1054_v0 }
 0x5e1   :  { %v1056_v11 = vadd.f32 %v1351_v59, %v1055_v4 }
 0x5e3   :  { %v1060_v47 = vsel %vm1059_vm2, %v1351_v59, %v1056_v11 }
 0x5e4   :  { %v1065_v15 = vsel %vm1062_vm6, %v1064_v13, %v1060_v47 }
 0x5e5   :  { %v1072_v18 = vrot.slane %v1065_v15, 1  ;;  %v1075_v27 = vmul.f32 %v1353_v20, %v1065_v15  ;;  %v1078_v60 = vrot.slane %v1065_v15, 2 }
 0x5e7   :  { %v1074_v22 = vmul.f32 %v1072_v18, %v974_v45 }
 0x5e9   :  { %v1076_v28 = vadd.f32 %v1075_v27, %v1074_v22 }
 0x5eb   :  { %1354 = vtanh.f32 %v1076_v28 }
 0x5f1   :  { %v1355_v30 = vpop.eup %1354 }
 0x5f2   :  { %v1080_v51 = vmul.f32 %v1355_v30, %v1078_v60 }
 0x5f4   :  { %v1082_v35 = vmul.f32 %v1081_v32, %v1080_v51 }
 0x5f6   :  { %v1083_v36 = vsel %vm326_vm0, %v1082_v35, 0.0 }
 0x5f7   :  { %1084 = vadd.xlane.f32.xlu0 %v1083_v36 }
 0x66a   :  { %v1085_v55 = vpop.xlane.xlu0 %1084 }
 0x66b   :  { %v1088_v7 = vadd.f32 %v1087_v3, %v1085_v55 }
 0x66d   :  { %1090 = vst.msk [vmem:[#allocation10] sm:$0x1] %vm1089_vm7, %v1088_v7 }
 0x66e   :  { %1101 = dma.vmem_to_hbm [thread:$0]  %s1097_s26, 16, %s1099_s29, [#allocation5]  }
 0x66f   :  { %1448 = dma.done.wait [#allocation5], 16  }
 0x670   :  { %1449 = vsyncadd [#allocation5], 4294967280 }
 0x671   :  { %1106 = vsyncpa [#allocation4], 1 }
 0x672   :  { %1107 = vsyncpa [#allocation9], 1 }
 0x673   :  { %1108 = vsyncpa [#allocation5], 1 }
 0x674   :  { %1109 = vsyncpa [#allocation6], 1 }

</bundles_post_ra>
